<compile_context>
chip_gen: v6e
topology: v6e:2x2x1
jax: 0.10.0
libtpu: 0.0.40
codegen_flags: <defaults>
</compile_context>

<pallas_src>
import jax
import jax.numpy as jnp
from jax import lax
from jax.experimental import pallas as pl
from jax.experimental.pallas import tpu as pltpu


def _round_up(n, m):
    return ((n + m - 1) // m) * m


def _rvq_fused_kernel(x_ref, cb_ref, esq_ref, cum_ref, idx_ref):
    """Fused residual VQ over all layers for one tile of rows.

    x_ref  : (TN, D)       input rows (residual_0)
    cb_ref : (n_q, K, D)   codebooks (resident in VMEM)
    esq_ref: (n_q, K)      precomputed ||e_k||^2 (hoisted out of the kernel)
    cum_ref: (n_q, TN, D)  cumulative quantized output after each layer
    idx_ref: (n_q, TN)     int32 nearest-code indices per layer (lane-dense)
    """
    n_q, K, _ = cb_ref.shape
    tn = x_ref.shape[0]

    x = x_ref[...].astype(jnp.float32)
    residual = x
    quant = jnp.zeros_like(x)

    # Hoisted iotas (JAX does not CSE broadcast_in_dim inside the loop).
    iota_nk = lax.broadcasted_iota(jnp.int32, (tn, K), 1)                  # (TN, K)
    iota_rows = lax.broadcasted_iota(jnp.int32, (8, K), 1).astype(jnp.float32)

    for l in range(n_q):                    # n_q is small & static -> unrolled
        e = cb_ref[l]                       # (K, D)
        e_sq = esq_ref[pl.ds(l, 1), :]      # (1, K)

        # argmin_k ||r - e_k||^2 == argmin_k (||e_k||^2 - 2 r.e_k)  (x_sq dropped)
        dots = jnp.dot(residual, e.T, preferred_element_type=jnp.float32)  # MXU
        dist = e_sq - 2.0 * dots                                           # (TN, K)
        dmin = jnp.min(dist, axis=-1, keepdims=True)
        hit = dist <= dmin
        idx_col = jnp.min(jnp.where(hit, iota_nk, K), axis=-1, keepdims=True)
        onehot = (iota_nk == idx_col).astype(jnp.float32)                  # (TN, K)

        # Codebook gather via MXU (exact: one-hot rows).
        q = jnp.dot(onehot, e, preferred_element_type=jnp.float32)         # (TN, D)
        quant = quant + q
        residual = residual - q
        cum_ref[l] = quant.astype(cum_ref.dtype)

        # Lane-dense index row via a tiny MXU matmul: (8,K) @ (K,TN) -> (8,TN).
        idx_rows = jnp.dot(iota_rows, onehot.T, preferred_element_type=jnp.float32)
        idx_ref[pl.ds(l, 1), :] = idx_rows[0:1, :].astype(jnp.int32)


def residual_vq_rows(x, codebooks, *, tile_n=512):
    """Fused residual VQ on rows of x.

    x:         (N, D) float32
    codebooks: (n_q, K, D) float32
    returns cum (n_q, N, D) cumulative quantized outputs, idx (n_q, N) int32.
    """
    N, D = x.shape
    n_q, K, _ = codebooks.shape

    # Lane-aligned row tile; pad N up to a tile multiple, slice back afterwards.
    tn = min(tile_n, _round_up(N, 128))
    n_pad = _round_up(N, tn)
    x_p = x if n_pad == N else jnp.pad(x, ((0, n_pad - N), (0, 0)))
    grid_n = n_pad // tn

    cb = codebooks.astype(jnp.float32)
    e_sq = jnp.sum(cb * cb, axis=-1)          # (n_q, K), hoisted out of the kernel

    cum, idx = pl.pallas_call(
        _rvq_fused_kernel,
        out_shape=(
            jax.ShapeDtypeStruct((n_q, n_pad, D), jnp.float32),
            jax.ShapeDtypeStruct((n_q, n_pad), jnp.int32),
        ),
        grid=(grid_n,),
        in_specs=[
            pl.BlockSpec((tn, D), lambda i: (i, 0)),
            pl.BlockSpec((n_q, K, D), lambda i: (0, 0, 0)),
            pl.BlockSpec((n_q, K), lambda i: (0, 0)),
        ],
        out_specs=(
            pl.BlockSpec((n_q, tn, D), lambda i: (0, i, 0)),
            pl.BlockSpec((n_q, tn), lambda i: (0, i)),
        ),
        compiler_params=pltpu.CompilerParams(
            dimension_semantics=("parallel",)),
    )(x_p.astype(jnp.float32), cb, e_sq)

    return cum[:, :N, :], idx[:, :N]


def quantizer_forward(z, codebooks):
    """Pallas implementation of Quantizer.forward (residual_vq).

    z:         (B, code_dim, T)   float32, channel-first (PyTorch layout)
    codebooks: (n_q, K, code_dim) float32
    returns (zq, embed_nums, vqloss, perplexity, all_layers_output)
    """
    B, D, T = z.shape
    n_q, K, _ = codebooks.shape
    N = B * T
    x = jnp.transpose(z, (0, 2, 1)).reshape(N, D).astype(jnp.float32)

    cum, idx = residual_vq_rows(x, codebooks)            # (n_q, N, D), (n_q, N)

    # commitment MSE per layer: q_l - residual_l == cum_l - x
    losses = jnp.mean((cum - x[None]) ** 2, axis=(1, 2))     # (n_q,)
    vqloss = jnp.mean(losses)

    # per-layer code-usage perplexity (over valid rows only)
    onehot = (idx[:, :, None] == jnp.arange(K)[None, None, :]).astype(jnp.float32)
    counts = jnp.sum(onehot, axis=1)                          # (n_q, K)
    probs = counts / jnp.maximum(jnp.sum(counts, axis=-1, keepdims=True), 1.0)
    perplexity = jnp.exp(-jnp.sum(probs * jnp.log(probs + 1e-10), axis=-1))

    # single transpose back to channel-first for all layers at once
    cum_bdt = jnp.transpose(cum.reshape(n_q, B, T, D), (0, 1, 3, 2))  # (n_q,B,D,T)
    all_layers_output = [cum_bdt[l] for l in range(n_q)]
    zq = cum_bdt[n_q - 1]                                    # (B, D, T)
    embed_nums = idx.reshape(n_q, B, T)                      # (n_q, B, T) int32
    return zq, embed_nums, vqloss, perplexity, all_layers_output


# ----------------------------- correctness checks -----------------------------

def _ref_forward_zq(z, codebooks):
    """Plain-JAX reference for the quantized output."""
    B, D, T = z.shape
    x = jnp.transpose(z, (0, 2, 1)).reshape(B * T, D)
    residual = x
    out = jnp.zeros_like(x)
    for l in range(codebooks.shape[0]):
        e = codebooks[l]
        dist = (jnp.sum(residual ** 2, -1, keepdims=True)
                - 2.0 * residual @ e.T + jnp.sum(e ** 2, -1))
        q = e[jnp.argmin(dist, axis=-1)]
        out = out + q
        residual = residual - q
    return jnp.transpose(out.reshape(B, T, D), (0, 2, 1))


def _check_consistency(z, codebooks, zq, embed_nums, all_layers_output,
                       q_atol=2e-4, opt_tol=1e-2):
    """Validate residual-VQ semantics from the kernel's own outputs."""
    B, D, T = z.shape
    n_q = codebooks.shape[0]
    x = jnp.transpose(z, (0, 2, 1)).reshape(-1, D)
    cum_prev = jnp.zeros_like(x)
    for l in range(n_q):
        cum_l = jnp.transpose(all_layers_output[l], (0, 2, 1)).reshape(-1, D)
        q_l = cum_l - cum_prev
        res_l = x - cum_prev
        idx_l = embed_nums[l].reshape(-1)
        # quantized vectors are exactly the selected codebook rows
        assert jnp.allclose(q_l, codebooks[l][idx_l], atol=q_atol)
        # selected code is (near-)optimal for the layer's residual
        d_sel = jnp.sum((res_l - codebooks[l][idx_l]) ** 2, -1)
        d_all = jnp.sum((res_l[:, None, :] - codebooks[l][None]) ** 2, -1)
        assert jnp.all(d_sel <= jnp.min(d_all, -1) + opt_tol)
        cum_prev = cum_l
    assert jnp.allclose(zq, all_layers_output[-1], atol=1e-6)


if __name__ == "__main__":
    fwd = jax.jit(quantizer_forward)

    # --- small config consistent with the module: code_dim=32, codebook_num=2,
    # --- codebook_size=128, batch=2, seq=16  (N=32 -> padded to one 128-row tile)
    key = jax.random.PRNGKey(0)
    k_z, k_e, k_z2, k_e2 = jax.random.split(key, 4)
    B, D, T = 2, 32, 16
    n_q, K = 2, 128
    z = jax.random.normal(k_z, (B, D, T), dtype=jnp.float32)
    codebooks = jax.random.normal(k_e, (n_q, K, D), dtype=jnp.float32)

    zq, embed_nums, vqloss, perplexity, all_layers_output = fwd(z, codebooks)
    jax.block_until_ready((zq, embed_nums, vqloss, perplexity, all_layers_output))

    assert zq.shape == (B, D, T)
    assert embed_nums.shape == (n_q, B, T) and embed_nums.dtype == jnp.int32
    assert vqloss.shape == () and bool(jnp.isfinite(vqloss))
    assert perplexity.shape == (n_q,)
    assert bool(jnp.all(perplexity >= 1.0)) and bool(jnp.all(perplexity <= K + 1e-3))
    assert len(all_layers_output) == n_q
    assert all(o.shape == (B, D, T) for o in all_layers_output)
    assert bool(jnp.all(embed_nums >= 0)) and bool(jnp.all(embed_nums < K))

    zq_ref = _ref_forward_zq(z, codebooks)
    assert jnp.allclose(zq, zq_ref, atol=1e-4, rtol=1e-4)
    _check_consistency(z, codebooks, zq, embed_nums, all_layers_output)

    # --- larger config exercising multi-tile grid + row padding (N=600 -> 2x512)
    B2, T2, n_q2 = 3, 200, 3
    z2 = jax.random.normal(k_z2, (B2, D, T2), dtype=jnp.float32)
    codebooks2 = jax.random.normal(k_e2, (n_q2, K, D), dtype=jnp.float32)
    zq2, en2, loss2, perp2, layers2 = fwd(z2, codebooks2)
    jax.block_until_ready((zq2, en2, loss2, perp2, layers2))

    assert zq2.shape == (B2, D, T2)
    assert en2.shape == (n_q2, B2, T2)
    assert perp2.shape == (n_q2,)
    assert len(layers2) == n_q2
    _check_consistency(z2, codebooks2, zq2, en2, layers2)

    print("KERNEL_OK")
</pallas_src>

<mosaic_0001>
module attributes {stable_mosaic.version = 11 : i64} {
  func.func @_rvq_fused_kernel(%arg0: i32, %arg1: memref<128x32xf32, #tpu.memory_space<vmem>>, %arg2: memref<2x128x32xf32, #tpu.memory_space<vmem>>, %arg3: memref<2x128xf32, #tpu.memory_space<vmem>>, %arg4: memref<2x128x32xf32, #tpu.memory_space<vmem>>, %arg5: memref<2x128xi32, #tpu.memory_space<vmem>>) attributes {dimension_semantics = [#tpu.dimension_semantics<parallel>], iteration_bounds = array<i64: 1>, scalar_prefetch = 0 : i64, scratch_operands = 0 : i64, tpu.core_type = #tpu.core_type<tc>, window_params = [{transform_indices = @transform_0, window_bounds = array<i64: 128, 32>}, {pipeline_mode = #tpu.pipeline_mode<synchronous>, transform_indices = @transform_1, window_bounds = array<i64: 2, 128, 32>}, {pipeline_mode = #tpu.pipeline_mode<synchronous>, transform_indices = @transform_2, window_bounds = array<i64: 2, 128>}, {transform_indices = @transform_3, window_bounds = array<i64: 2, 128, 32>}, {transform_indices = @transform_4, window_bounds = array<i64: 2, 128>}]} {
    %c0 = arith.constant 0 : index
    %c0_0 = arith.constant 0 : index
    %0 = vector.load %arg1[%c0, %c0_0] : memref<128x32xf32, #tpu.memory_space<vmem>>, vector<128x32xf32>
    %cst = arith.constant 0.000000e+00 : f32
    %1 = vector.broadcast %cst : f32 to vector<128x32xf32>
    %2 = tpu.iota {dimensions = array<i32: 1>} : vector<128x128xi32>
    %3 = tpu.iota {dimensions = array<i32: 1>} : vector<8x128xi32>
    %4 = arith.sitofp %3 : vector<8x128xi32> to vector<8x128xf32>
    %c0_1 = arith.constant 0 : index
    %c0_2 = arith.constant 0 : index
    %c0_3 = arith.constant 0 : index
    %5 = vector.load %arg2[%c0_1, %c0_2, %c0_3] : memref<2x128x32xf32, #tpu.memory_space<vmem>>, vector<1x128x32xf32>
    %6 = vector.shape_cast %5 : vector<1x128x32xf32> to vector<128x32xf32>
    %c0_4 = arith.constant 0 : index
    %c0_5 = arith.constant 0 : index
    %7 = vector.load %arg3[%c0_4, %c0_5] : memref<2x128xf32, #tpu.memory_space<vmem>>, vector<1x128xf32>
    %8 = tpu.transpose %6, [1, 0] : vector<128x32xf32> -> vector<32x128xf32>
    %cst_6 = arith.constant dense<0.000000e+00> : vector<128x128xf32>
    %9 = tpu.matmul %0, %8, %cst_6 {dimension_numbers = #tpu.dot_dimension_numbers<[1], [0], [0], [1], [0, 0, 1, 1], [], []>} : vector<128x32xf32>, vector<32x128xf32>, vector<128x128xf32> -> vector<128x128xf32>
    %cst_7 = arith.constant 2.000000e+00 : f32
    %10 = vector.broadcast %cst_7 : f32 to vector<128x128xf32>
    %11 = arith.mulf %10, %9 : vector<128x128xf32>
    %12 = vector.broadcast %7 : vector<1x128xf32> to vector<128x128xf32>
    %13 = arith.subf %12, %11 : vector<128x128xf32>
    %cst_8 = arith.constant dense<0x7F800000> : vector<128xf32>
    %14 = vector.multi_reduction <minimumf>, %13, %cst_8 [1] : vector<128x128xf32> to vector<128xf32>
    %15 = vector.shape_cast %14 : vector<128xf32> to vector<128x1xf32>
    %16 = vector.broadcast %15 : vector<128x1xf32> to vector<128x128xf32>
    %17 = arith.cmpf ole, %13, %16 : vector<128x128xf32>
    %c128_i32 = arith.constant 128 : i32
    %18 = vector.broadcast %c128_i32 : i32 to vector<128x128xi32>
    %19 = arith.select %17, %2, %18 : vector<128x128xi1>, vector<128x128xi32>
    %cst_9 = arith.constant dense<2147483647> : vector<128xi32>
    %20 = vector.multi_reduction <minsi>, %19, %cst_9 [1] : vector<128x128xi32> to vector<128xi32>
    %21 = vector.shape_cast %20 : vector<128xi32> to vector<128x1xi32>
    %22 = vector.broadcast %21 : vector<128x1xi32> to vector<128x128xi32>
    %23 = arith.cmpi eq, %2, %22 : vector<128x128xi32>
    %24 = arith.extui %23 : vector<128x128xi1> to vector<128x128xi32>
    %25 = arith.sitofp %24 : vector<128x128xi32> to vector<128x128xf32>
    %cst_10 = arith.constant dense<0.000000e+00> : vector<128x32xf32>
    %26 = tpu.matmul %25, %6, %cst_10 {dimension_numbers = #tpu.dot_dimension_numbers<[1], [0], [0], [1], [0, 0, 1, 1], [], []>} : vector<128x128xf32>, vector<128x32xf32>, vector<128x32xf32> -> vector<128x32xf32>
    %27 = arith.addf %1, %26 : vector<128x32xf32>
    %28 = arith.subf %0, %26 : vector<128x32xf32>
    %c0_11 = arith.constant 0 : index
    %c0_12 = arith.constant 0 : index
    %c0_13 = arith.constant 0 : index
    %29 = vector.load %arg4[%c0_11, %c0_12, %c0_13] : memref<2x128x32xf32, #tpu.memory_space<vmem>>, vector<1x128x32xf32>
    %30 = vector.shape_cast %29 : vector<1x128x32xf32> to vector<128x32xf32>
    %31 = vector.shape_cast %27 : vector<128x32xf32> to vector<1x128x32xf32>
    tpu.vector_store %arg4[%c0_11, %c0_12, %c0_13], %31 {strides = array<i32>} : memref<2x128x32xf32, #tpu.memory_space<vmem>>, vector<1x128x32xf32>,
    %32 = tpu.transpose %25, [1, 0] : vector<128x128xf32> -> vector<128x128xf32>
    %cst_14 = arith.constant dense<0.000000e+00> : vector<8x128xf32>
    %33 = tpu.matmul %4, %32, %cst_14 {dimension_numbers = #tpu.dot_dimension_numbers<[1], [0], [0], [1], [0, 0, 1, 1], [], []>} : vector<8x128xf32>, vector<128x128xf32>, vector<8x128xf32> -> vector<8x128xf32>
    %34 = vector.extract_strided_slice %33 {offsets = [0, 0], sizes = [1, 128], strides = [1, 1]} : vector<8x128xf32> to vector<1x128xf32>
    %35 = arith.fptosi %34 : vector<1x128xf32> to vector<1x128xi32>
    %c0_15 = arith.constant 0 : index
    %c0_16 = arith.constant 0 : index
    %36 = vector.load %arg5[%c0_15, %c0_16] : memref<2x128xi32, #tpu.memory_space<vmem>>, vector<1x128xi32>
    tpu.vector_store %arg5[%c0_15, %c0_16], %35 {strides = array<i32>} : memref<2x128xi32, #tpu.memory_space<vmem>>, vector<1x128xi32>,
    %c1 = arith.constant 1 : index
    %c0_17 = arith.constant 0 : index
    %c0_18 = arith.constant 0 : index
    %37 = vector.load %arg2[%c1, %c0_17, %c0_18] : memref<2x128x32xf32, #tpu.memory_space<vmem>>, vector<1x128x32xf32>
    %38 = vector.shape_cast %37 : vector<1x128x32xf32> to vector<128x32xf32>
    %c1_19 = arith.constant 1 : index
    %c0_20 = arith.constant 0 : index
    %39 = vector.load %arg3[%c1_19, %c0_20] : memref<2x128xf32, #tpu.memory_space<vmem>>, vector<1x128xf32>
    %40 = tpu.transpose %38, [1, 0] : vector<128x32xf32> -> vector<32x128xf32>
    %cst_21 = arith.constant dense<0.000000e+00> : vector<128x128xf32>
    %41 = tpu.matmul %28, %40, %cst_21 {dimension_numbers = #tpu.dot_dimension_numbers<[1], [0], [0], [1], [0, 0, 1, 1], [], []>} : vector<128x32xf32>, vector<32x128xf32>, vector<128x128xf32> -> vector<128x128xf32>
    %cst_22 = arith.constant 2.000000e+00 : f32
    %42 = vector.broadcast %cst_22 : f32 to vector<128x128xf32>
    %43 = arith.mulf %42, %41 : vector<128x128xf32>
    %44 = vector.broadcast %39 : vector<1x128xf32> to vector<128x128xf32>
    %45 = arith.subf %44, %43 : vector<128x128xf32>
    %cst_23 = arith.constant dense<0x7F800000> : vector<128xf32>
    %46 = vector.multi_reduction <minimumf>, %45, %cst_23 [1] : vector<128x128xf32> to vector<128xf32>
    %47 = vector.shape_cast %46 : vector<128xf32> to vector<128x1xf32>
    %48 = vector.broadcast %47 : vector<128x1xf32> to vector<128x128xf32>
    %49 = arith.cmpf ole, %45, %48 : vector<128x128xf32>
    %c128_i32_24 = arith.constant 128 : i32
    %50 = vector.broadcast %c128_i32_24 : i32 to vector<128x128xi32>
    %51 = arith.select %49, %2, %50 : vector<128x128xi1>, vector<128x128xi32>
    %cst_25 = arith.constant dense<2147483647> : vector<128xi32>
    %52 = vector.multi_reduction <minsi>, %51, %cst_25 [1] : vector<128x128xi32> to vector<128xi32>
    %53 = vector.shape_cast %52 : vector<128xi32> to vector<128x1xi32>
    %54 = vector.broadcast %53 : vector<128x1xi32> to vector<128x128xi32>
    %55 = arith.cmpi eq, %2, %54 : vector<128x128xi32>
    %56 = arith.extui %55 : vector<128x128xi1> to vector<128x128xi32>
    %57 = arith.sitofp %56 : vector<128x128xi32> to vector<128x128xf32>
    %cst_26 = arith.constant dense<0.000000e+00> : vector<128x32xf32>
    %58 = tpu.matmul %57, %38, %cst_26 {dimension_numbers = #tpu.dot_dimension_numbers<[1], [0], [0], [1], [0, 0, 1, 1], [], []>} : vector<128x128xf32>, vector<128x32xf32>, vector<128x32xf32> -> vector<128x32xf32>
    %59 = arith.addf %27, %58 : vector<128x32xf32>
    %c1_27 = arith.constant 1 : index
    %c0_28 = arith.constant 0 : index
    %c0_29 = arith.constant 0 : index
    %60 = vector.load %arg4[%c1_27, %c0_28, %c0_29] : memref<2x128x32xf32, #tpu.memory_space<vmem>>, vector<1x128x32xf32>
    %61 = vector.shape_cast %60 : vector<1x128x32xf32> to vector<128x32xf32>
    %62 = vector.shape_cast %59 : vector<128x32xf32> to vector<1x128x32xf32>
    tpu.vector_store %arg4[%c1_27, %c0_28, %c0_29], %62 {strides = array<i32>} : memref<2x128x32xf32, #tpu.memory_space<vmem>>, vector<1x128x32xf32>,
    %63 = tpu.transpose %57, [1, 0] : vector<128x128xf32> -> vector<128x128xf32>
    %cst_30 = arith.constant dense<0.000000e+00> : vector<8x128xf32>
    %64 = tpu.matmul %4, %63, %cst_30 {dimension_numbers = #tpu.dot_dimension_numbers<[1], [0], [0], [1], [0, 0, 1, 1], [], []>} : vector<8x128xf32>, vector<128x128xf32>, vector<8x128xf32> -> vector<8x128xf32>
    %65 = vector.extract_strided_slice %64 {offsets = [0, 0], sizes = [1, 128], strides = [1, 1]} : vector<8x128xf32> to vector<1x128xf32>
    %66 = arith.fptosi %65 : vector<1x128xf32> to vector<1x128xi32>
    %c1_31 = arith.constant 1 : index
    %c0_32 = arith.constant 0 : index
    %67 = vector.load %arg5[%c1_31, %c0_32] : memref<2x128xi32, #tpu.memory_space<vmem>>, vector<1x128xi32>
    tpu.vector_store %arg5[%c1_31, %c0_32], %66 {strides = array<i32>} : memref<2x128xi32, #tpu.memory_space<vmem>>, vector<1x128xi32>,
    return
  }
  func.func @transform_0(%arg0: i32) -> (i32, i32) {
    %c0_i32 = arith.constant 0 : i32
    %c0_i32_0 = arith.constant 0 : i32
    return %arg0, %c0_i32 : i32, i32
  }
  func.func @transform_1(%arg0: i32) -> (i32, i32, i32) {
    %c0_i32 = arith.constant 0 : i32
    %c0_i32_0 = arith.constant 0 : i32
    %c0_i32_1 = arith.constant 0 : i32
    %c0_i32_2 = arith.constant 0 : i32
    return %c0_i32, %c0_i32_0, %c0_i32_1 : i32, i32, i32
  }
  func.func @transform_2(%arg0: i32) -> (i32, i32) {
    %c0_i32 = arith.constant 0 : i32
    %c0_i32_0 = arith.constant 0 : i32
    %c0_i32_1 = arith.constant 0 : i32
    return %c0_i32, %c0_i32_0 : i32, i32
  }
  func.func @transform_3(%arg0: i32) -> (i32, i32, i32) {
    %c0_i32 = arith.constant 0 : i32
    %c0_i32_0 = arith.constant 0 : i32
    %c0_i32_1 = arith.constant 0 : i32
    return %c0_i32, %arg0, %c0_i32_0 : i32, i32, i32
  }
  func.func @transform_4(%arg0: i32) -> (i32, i32) {
    %c0_i32 = arith.constant 0 : i32
    %c0_i32_0 = arith.constant 0 : i32
    return %c0_i32, %arg0 : i32, i32
  }
}

</mosaic_0001>

<bundles_post_ra>
// kernel: quantizer_forward.1
= control target key start
LH: loop header
LB: loop body
LE: loop exit
PB: predicated region body
PF: predicated region fallthrough
CT: control target
= control target key end

     0   :  { %vm3990_vm0 = vcmask 261120   ;;  %s3974_s1 = inlined_call_operand.vmem [shape: f32[2,128,32], index: 1, kind: input, shape index: {}]   ;;  %s3975_s0 = inlined_call_operand.vmem [shape: f32[128,32], index: 0, kind: input, shape index: {}]   ;;  %s3976_s2 = inlined_call_operand.vmem [shape: f32[2,128], index: 2, kind: input, shape index: {}]   ;;  %s3977_s3 = inlined_call_operand.vmem [shape: f32[2,128,32], index: 3, kind: output, shape index: {0}]   ;;  %s3978_s4 = inlined_call_operand.vmem [shape: s32[2,128], index: 4, kind: output, shape index: {1}]  }
   0x1   :  { %v50_v0 = vld [vmem:[%s3974_s1 + $0x78] sm:$0xff]  ;;  %v49_v1 = vld [vmem:[%s3974_s1 + $0x70] sm:$0xff]  ;;  %v48_v2 = vld [vmem:[%s3974_s1 + $0x68] sm:$0xff] }
   0x2   :  { %2176 = vmatprep.subr.msk.mxu0 %vm3990_vm0, %v50_v0  ;;  %2232 = vmatprep.subr.mxu1 %v50_v0  ;;  %v16_v3 = vld [vmem:[%s3975_s0] sm:$0xff]  ;;  %v46_v5 = vld [vmem:[%s3974_s1 + $0x58] sm:$0xff]  ;;  %v45_v6 = vld [vmem:[%s3974_s1 + $0x50] sm:$0xff] }
   0x3   :  { %2177 = vmatpush3.xpose.msk.msra.mxu0 %vm3990_vm0, %v50_v0  ;;  %2233 = vmatpush3.msra.mxu1 %v50_v0  ;;  %v47_v4 = vld [vmem:[%s3974_s1 + $0x60] sm:$0xff]  ;;  %v44_v7 = vld [vmem:[%s3974_s1 + $0x48] sm:$0xff]  ;;  %v42_v9 = vld [vmem:[%s3974_s1 + $0x38] sm:$0xff] }
   0x4   :  { %2178 = vmatprep.subr.msk.mxu0 %vm3990_vm0, %v49_v1  ;;  %2234 = vmatprep.subr.mxu1 %v49_v1  ;;  %v43_v8 = vld [vmem:[%s3974_s1 + $0x40] sm:$0xff]  ;;  %v41_v10 = vld [vmem:[%s3974_s1 + $0x30] sm:$0xff]  ;;  %v40_v11 = vld [vmem:[%s3974_s1 + $0x28] sm:$0xff] }
   0x5   :  { %2235 = vmatpush3.msra.mxu1 %v49_v1  ;;  %2208 = vmatprep.mubr.msk.f32.mxu0 %vm3990_vm0, %v16_v3  ;;  %v39_v12 = vld [vmem:[%s3974_s1 + $0x20] sm:$0xff]  ;;  %v38_v13 = vld [vmem:[%s3974_s1 + $0x18] sm:$0xff]  ;;  %v37_v14 = vld [vmem:[%s3974_s1 + $0x10] sm:$0xff] }
   0x6   :  { %2236 = vmatprep.subr.mxu1 %v48_v2  ;;  %v36_v15 = vld [vmem:[%s3974_s1 + $0x8] sm:$0xff]  ;;  %v35_v16 = vld [vmem:[%s3974_s1] sm:$0xff]  ;;  %v2604_v18 = vld [vmem:[%s3975_s0 + $0x10] sm:$0xff] }
   0x7   :  { %2179 = vmatpush3.xpose.msk.msra.mxu0 %vm3990_vm0, %v49_v1  ;;  %2237 = vmatpush3.msra.mxu1 %v48_v2  ;;  %v2599_v17 = vld [vmem:[%s3975_s0 + $0x8] sm:$0xff]  ;;  %v2613_v19 = vld [vmem:[%s3975_s0 + $0x18] sm:$0xff]  ;;  %v2618_v20 = vld [vmem:[%s3975_s0 + $0x20] sm:$0xff] }
   0x8   :  { %2180 = vmatprep.subr.msk.mxu0 %vm3990_vm0, %v48_v2  ;;  %2238 = vmatprep.subr.mxu1 %v47_v4  ;;  %v2627_v21 = vld [vmem:[%s3975_s0 + $0x28] sm:$0xff]  ;;  %v2632_v22 = vld [vmem:[%s3975_s0 + $0x30] sm:$0xff]  ;;  %v2641_v23 = vld [vmem:[%s3975_s0 + $0x38] sm:$0xff] }
   0x9   :  { %2239 = vmatpush3.msra.mxu1 %v47_v4  ;;  %v2646_v24 = vld [vmem:[%s3975_s0 + $0x40] sm:$0xff]  ;;  %v2655_v25 = vld [vmem:[%s3975_s0 + $0x48] sm:$0xff]  ;;  %v26_v26 = vld [vmem:[%s3975_s0 + $0x50] sm:$0xff] }
   0xa   :  { %2240 = vmatprep.subr.mxu1 %v46_v5  ;;  %v27_v27 = vld [vmem:[%s3975_s0 + $0x58] sm:$0xff]  ;;  %v28_v28 = vld [vmem:[%s3975_s0 + $0x60] sm:$0xff]  ;;  %v29_v29 = vld [vmem:[%s3975_s0 + $0x68] sm:$0xff] }
   0xb   :  { %2181 = vmatpush3.xpose.msk.msra.mxu0 %vm3990_vm0, %v48_v2  ;;  %2241 = vmatpush3.msra.mxu1 %v46_v5  ;;  %v30_v30 = vld [vmem:[%s3975_s0 + $0x70] sm:$0xff]  ;;  %v31_v31 = vld [vmem:[%s3975_s0 + $0x78] sm:$0xff]  ;;  %v1852_v36 = vld [vmem:[%s3976_s2] ss:$0 sm:$0xff] }
   0xc   :  { %2182 = vmatprep.subr.msk.mxu0 %vm3990_vm0, %v47_v4  ;;  %2242 = vmatprep.subr.mxu1 %v45_v6 }
   0xd   :  { %2243 = vmatpush3.msra.mxu1 %v45_v6 }
   0xe   :  { %2244 = vmatprep.subr.mxu1 %v44_v7 }
   0xf   :  { %2183 = vmatpush3.xpose.msk.msra.mxu0 %vm3990_vm0, %v47_v4  ;;  %2245 = vmatpush3.msra.mxu1 %v44_v7 }
  0x10   :  { %2184 = vmatprep.subr.msk.mxu0 %vm3990_vm0, %v46_v5  ;;  %2246 = vmatprep.subr.mxu1 %v43_v8 }
  0x11   :  { %2247 = vmatpush3.msra.mxu1 %v43_v8 }
  0x12   :  { %2248 = vmatprep.subr.mxu1 %v42_v9 }
  0x13   :  { %2185 = vmatpush3.xpose.msk.msra.mxu0 %vm3990_vm0, %v46_v5  ;;  %2249 = vmatpush3.msra.mxu1 %v42_v9 }
  0x14   :  { %2186 = vmatprep.subr.msk.mxu0 %vm3990_vm0, %v45_v6  ;;  %2250 = vmatprep.subr.mxu1 %v41_v10 }
  0x15   :  { %2251 = vmatpush3.msra.mxu1 %v41_v10 }
  0x16   :  { %2252 = vmatprep.subr.mxu1 %v40_v11 }
  0x17   :  { %2187 = vmatpush3.xpose.msk.msra.mxu0 %vm3990_vm0, %v45_v6  ;;  %2253 = vmatpush3.msra.mxu1 %v40_v11 }
  0x18   :  { %2188 = vmatprep.subr.msk.mxu0 %vm3990_vm0, %v44_v7  ;;  %2254 = vmatprep.subr.mxu1 %v39_v12 }
  0x19   :  { %2255 = vmatpush3.msra.mxu1 %v39_v12 }
  0x1a   :  { %2256 = vmatprep.subr.mxu1 %v38_v13 }
  0x1b   :  { %2189 = vmatpush3.xpose.msk.msra.mxu0 %vm3990_vm0, %v44_v7  ;;  %2257 = vmatpush3.msra.mxu1 %v38_v13 }
  0x1c   :  { %2190 = vmatprep.subr.msk.mxu0 %vm3990_vm0, %v43_v8  ;;  %2258 = vmatprep.subr.mxu1 %v37_v14 }
  0x1d   :  { %2259 = vmatpush3.msra.mxu1 %v37_v14 }
  0x1e   :  { %2260 = vmatprep.subr.mxu1 %v36_v15 }
  0x1f   :  { %2191 = vmatpush3.xpose.msk.msra.mxu0 %vm3990_vm0, %v43_v8  ;;  %2261 = vmatpush3.msra.mxu1 %v36_v15 }
  0x20   :  { %2192 = vmatprep.subr.msk.mxu0 %vm3990_vm0, %v42_v9  ;;  %2262 = vmatprep.subr.mxu1 %v35_v16 }
  0x21   :  { %2263 = vmatpush3.msra.mxu1 %v35_v16 }
  0x23   :  { %2193 = vmatpush3.xpose.msk.msra.mxu0 %vm3990_vm0, %v42_v9 }
  0x24   :  { %2194 = vmatprep.subr.msk.mxu0 %vm3990_vm0, %v41_v10 }
  0x27   :  { %2195 = vmatpush3.xpose.msk.msra.mxu0 %vm3990_vm0, %v41_v10 }
  0x28   :  { %2196 = vmatprep.subr.msk.mxu0 %vm3990_vm0, %v40_v11 }
  0x2b   :  { %2197 = vmatpush3.xpose.msk.msra.mxu0 %vm3990_vm0, %v40_v11 }
  0x2c   :  { %2198 = vmatprep.subr.msk.mxu0 %vm3990_vm0, %v39_v12 }
  0x2f   :  { %2199 = vmatpush3.xpose.msk.msra.mxu0 %vm3990_vm0, %v39_v12 }
  0x30   :  { %2200 = vmatprep.subr.msk.mxu0 %vm3990_vm0, %v38_v13 }
  0x33   :  { %2201 = vmatpush3.xpose.msk.msra.mxu0 %vm3990_vm0, %v38_v13 }
  0x34   :  { %2202 = vmatprep.subr.msk.mxu0 %vm3990_vm0, %v37_v14 }
  0x37   :  { %2203 = vmatpush3.xpose.msk.msra.mxu0 %vm3990_vm0, %v37_v14 }
  0x38   :  { %2204 = vmatprep.subr.msk.mxu0 %vm3990_vm0, %v36_v15 }
  0x3b   :  { %2205 = vmatpush3.xpose.msk.msra.mxu0 %vm3990_vm0, %v36_v15 }
  0x3c   :  { %2206 = vmatprep.subr.msk.mxu0 %vm3990_vm0, %v35_v16 }
  0x3f   :  { %2207 = vmatpush3.xpose.msk.msra.mxu0 %vm3990_vm0, %v35_v16 }
  0x42   :  { %2209 = vmatmul.mubr.msk.f32.vlgmr.msra.gmra.mxu0 %vm3990_vm0, %v2599_v17 }
  0x43   :  { %2211 = vmatprep.mubr.msk.f32.mxu0 %vm3990_vm0, %v2604_v18 }
  0x46   :  { %2212 = vmatmul.mubr.msk.f32.gmra.mxu0 %vm3990_vm0, %v2613_v19 }
  0x47   :  { %2214 = vmatprep.mubr.msk.f32.mxu0 %vm3990_vm0, %v2618_v20 }
  0x4a   :  { %2215 = vmatmul.mubr.msk.f32.gmra.mxu0 %vm3990_vm0, %v2627_v21 }
  0x4b   :  { %2217 = vmatprep.mubr.msk.f32.mxu0 %vm3990_vm0, %v2632_v22 }
  0x4e   :  { %2218 = vmatmul.mubr.msk.f32.gmra.mxu0 %vm3990_vm0, %v2641_v23 }
  0x4f   :  { %2220 = vmatprep.mubr.msk.f32.mxu0 %vm3990_vm0, %v2646_v24 }
  0x52   :  { %2221 = vmatmul.mubr.msk.f32.gmra.mxu0 %vm3990_vm0, %v2655_v25 }
  0x53   :  { %2223 = vmatprep.mubr.msk.f32.mxu0 %vm3990_vm0, %v26_v26  ;;  %v32_v26 = vlaneseq }
  0x56   :  { %2224 = vmatmul.mubr.msk.f32.gmra.mxu0 %vm3990_vm0, %v27_v27  ;;  %v2734_v27 = vand.u32 127, %v32_v26 }
  0x57   :  { %2226 = vmatprep.mubr.msk.f32.mxu0 %vm3990_vm0, %v28_v28 }
  0x5a   :  { %2227 = vmatmul.mubr.msk.f32.gmra.mxu0 %vm3990_vm0, %v29_v29 }
  0x5b   :  { %2229 = vmatprep.mubr.msk.f32.mxu0 %vm3990_vm0, %v30_v30 }
  0x5e   :  { %2230 = vmatmul.mubr.msk.f32.gmra.mxu0 %vm3990_vm0, %v31_v31 }
 0x102   :  { %v2210_v32 = vpop.f32.mrf.mxu0 }
 0x103   :  { %v295_v37 = vmul.f32 2.0, %v2210_v32 }
 0x104   :  { %v215_v33 = vpop.f32.mrf.mxu0 }
 0x105   :  { %v294_v34 = vmul.f32 2.0, %v215_v33  ;;  %v2689_v43 = vsub.f32 %v1852_v36, %v295_v37 }
 0x106   :  { %v2213_v35 = vpop.f32.mrf.mxu0 }
 0x107   :  { %v2686_v38 = vsub.f32 %v1852_v36, %v294_v34  ;;  %v297_v42 = vmul.f32 2.0, %v2213_v35 }
 0x108   :  { %v225_v39 = vpop.f32.mrf.mxu0 }
 0x109   :  { %v296_v40 = vmul.f32 2.0, %v225_v39  ;;  %330 = vmin.xlane.f32.xlu0 %v2686_v38  ;;  %v2695_v49 = vsub.f32 %v1852_v36, %v297_v42 }
 0x10a   :  { %v2216_v41 = vpop.f32.mrf.mxu0 }
 0x10b   :  { %v2691_v44 = vsub.f32 %v1852_v36, %v296_v40  ;;  %v299_v48 = vmul.f32 2.0, %v2216_v41 }
 0x10c   :  { %v235_v45 = vpop.f32.mrf.mxu0 }
 0x10d   :  { %v298_v46 = vmul.f32 2.0, %v235_v45  ;;  %332 = vmin.xlane.f32.xlu0 %v2689_v43  ;;  %334 = vmin.xlane.f32.xlu1 %v2691_v44  ;;  %v2701_v55 = vsub.f32 %v1852_v36, %v299_v48 }
 0x10e   :  { %v2219_v47 = vpop.f32.mrf.mxu0 }
 0x10f   :  { %v2697_v50 = vsub.f32 %v1852_v36, %v298_v46  ;;  %v301_v54 = vmul.f32 2.0, %v2219_v47 }
 0x110   :  { %v245_v51 = vpop.f32.mrf.mxu0 }
 0x111   :  { %v300_v52 = vmul.f32 2.0, %v245_v51  ;;  %336 = vmin.xlane.f32.xlu1 %v2695_v49  ;;  %338 = vmin.xlane.f32.xlu0 %v2697_v50  ;;  %v2707_v61 = vsub.f32 %v1852_v36, %v301_v54 }
 0x112   :  { %v2222_v53 = vpop.f32.mrf.mxu0 }
 0x113   :  { %v2703_v56 = vsub.f32 %v1852_v36, %v300_v52  ;;  %v303_v60 = vmul.f32 2.0, %v2222_v53 }
 0x114   :  { %v255_v57 = vpop.f32.mrf.mxu0 }
 0x115   :  { %v302_v58 = vmul.f32 2.0, %v255_v57  ;;  %340 = vmin.xlane.f32.xlu1 %v2701_v55  ;;  %342 = vmin.xlane.f32.xlu0 %v2703_v56  ;;  %v2713_v3 = vsub.f32 %v1852_v36, %v303_v60 }
 0x116   :  { %v2225_v59 = vpop.f32.mrf.mxu0 }
 0x117   :  { %v2709_v62 = vsub.f32 %v1852_v36, %v302_v58  ;;  %v305_v2 = vmul.f32 2.0, %v2225_v59 }
 0x118   :  { %v265_v63 = vpop.f32.mrf.mxu0 }
 0x119   :  { %v304_v0 = vmul.f32 2.0, %v265_v63  ;;  %344 = vmin.xlane.f32.xlu1 %v2707_v61  ;;  %346 = vmin.xlane.f32.xlu0 %v2709_v62  ;;  %v2719_v9 = vsub.f32 %v1852_v36, %v305_v2 }
 0x11a   :  { %v2228_v1 = vpop.f32.mrf.mxu0 }
 0x11b   :  { %v2715_v4 = vsub.f32 %v1852_v36, %v304_v0  ;;  %v307_v8 = vmul.f32 2.0, %v2228_v1 }
 0x11c   :  { %v275_v5 = vpop.f32.mrf.mxu0 }
 0x11d   :  { %v306_v6 = vmul.f32 2.0, %v275_v5  ;;  %348 = vmin.xlane.f32.xlu1 %v2713_v3  ;;  %350 = vmin.xlane.f32.xlu0 %v2715_v4  ;;  %v2725_v14 = vsub.f32 %v1852_v36, %v307_v8 }
 0x11e   :  { %v2231_v7 = vpop.f32.mrf.mxu0 }
 0x11f   :  { %v2721_v10 = vsub.f32 %v1852_v36, %v306_v6  ;;  %v309_v13 = vmul.f32 2.0, %v2231_v7 }
 0x120   :  { %v285_v11 = vpop.f32.mrf.mxu0 }
 0x121   :  { %v308_v12 = vmul.f32 2.0, %v285_v11  ;;  %352 = vmin.xlane.f32.xlu1 %v2719_v9  ;;  %354 = vmin.xlane.f32.xlu0 %v2721_v10  ;;  %v2731_v16 = vsub.f32 %v1852_v36, %v309_v13 }
 0x123   :  { %v2727_v15 = vsub.f32 %v1852_v36, %v308_v12 }
 0x125   :  { %356 = vmin.xlane.f32.xlu1 %v2725_v14  ;;  %358 = vmin.xlane.f32.xlu0 %v2727_v15 }
 0x129   :  { %360 = vmin.xlane.f32.xlu1 %v2731_v16 }
 0x192   :  { %v331_v28 = vpop.xlane.xlu0 %330 }
 0x193   :  { %vm362_vm1 = vcmp.le.f32.partialorder %v2686_v38, %v331_v28 }
 0x194   :  { %v2738_v29 = vsel %vm362_vm1, %v2734_v27, 128 }
 0x195   :  { %v395_v30 = vshra.s32 %v2738_v29, 16 }
 0x196   :  { %v333_v31 = vpop.xlane.xlu0 %332  ;;  %v335_v32 = vpop.xlane.xlu1 %334 }
 0x197   :  { %vm363_vm2 = vcmp.le.f32.partialorder %v2689_v43, %v333_v31  ;;  %vm364_vm3 = vcmp.le.f32.partialorder %v2691_v44, %v335_v32  ;;  %v2743_v33 = vcvt.s32.f32 %v395_v30 }
 0x198   :  { %v2746_v34 = vsel %vm363_vm2, %v2734_v27, 128  ;;  %v2749_v35 = vsel %vm364_vm3, %v2734_v27, 128 }
 0x199   :  { %398 = vmin.xlane.f32.xlu0 %v2743_v33  ;;  %v409_v36 = vshra.s32 %v2746_v34, 16  ;;  %v423_v37 = vshra.s32 %v2749_v35, 16 }
 0x19a   :  { %v337_v38 = vpop.xlane.xlu1 %336  ;;  %v339_v39 = vpop.xlane.xlu0 %338 }
 0x19b   :  { %vm365_vm4 = vcmp.le.f32.partialorder %v2695_v49, %v337_v38  ;;  %vm366_vm5 = vcmp.le.f32.partialorder %v2697_v50, %v339_v39  ;;  %v2756_v40 = vcvt.s32.f32 %v409_v36  ;;  %v2758_v41 = vcvt.s32.f32 %v423_v37 }
 0x19c   :  { %v2761_v42 = vsel %vm365_vm4, %v2734_v27, 128  ;;  %v2764_v43 = vsel %vm366_vm5, %v2734_v27, 128 }
 0x19d   :  { %412 = vmin.xlane.f32.xlu1 %v2756_v40  ;;  %426 = vmin.xlane.f32.xlu0 %v2758_v41  ;;  %v437_v44 = vshra.s32 %v2761_v42, 16  ;;  %v451_v45 = vshra.s32 %v2764_v43, 16 }
 0x19e   :  { %v341_v46 = vpop.xlane.xlu1 %340  ;;  %v343_v47 = vpop.xlane.xlu0 %342 }
 0x19f   :  { %vm367_vm6 = vcmp.le.f32.partialorder %v2701_v55, %v341_v46  ;;  %vm368_vm7 = vcmp.le.f32.partialorder %v2703_v56, %v343_v47  ;;  %v2772_v48 = vcvt.s32.f32 %v437_v44  ;;  %v2774_v49 = vcvt.s32.f32 %v451_v45 }
 0x1a0   :  { %v2777_v50 = vsel %vm367_vm6, %v2734_v27, 128  ;;  %v2780_v51 = vsel %vm368_vm7, %v2734_v27, 128  ;;  %v394_v47 = vand.u32 65535, %v2738_v29 }
 0x1a1   :  { %440 = vmin.xlane.f32.xlu1 %v2772_v48  ;;  %454 = vmin.xlane.f32.xlu0 %v2774_v49  ;;  %v465_v52 = vshra.s32 %v2777_v50, 16  ;;  %v479_v53 = vshra.s32 %v2780_v51, 16 }
 0x1a2   :  { %v345_v54 = vpop.xlane.xlu1 %344  ;;  %v347_v55 = vpop.xlane.xlu0 %346 }
 0x1a3   :  { %vm369_vm8 = vcmp.le.f32.partialorder %v2707_v61, %v345_v54  ;;  %vm370_vm9 = vcmp.le.f32.partialorder %v2709_v62, %v347_v55  ;;  %v2788_v56 = vcvt.s32.f32 %v465_v52  ;;  %v2790_v57 = vcvt.s32.f32 %v479_v53 }
 0x1a4   :  { %v2793_v58 = vsel %vm369_vm8, %v2734_v27, 128  ;;  %v2796_v59 = vsel %vm370_vm9, %v2734_v27, 128  ;;  %v422_v52 = vand.u32 65535, %v2749_v35  ;;  %v396_v54 = vcvt.s32.f32 %v394_v47 }
 0x1a5   :  { %468 = vmin.xlane.f32.xlu1 %v2788_v56  ;;  %482 = vmin.xlane.f32.xlu0 %v2790_v57  ;;  %v493_v60 = vshra.s32 %v2793_v58, 16  ;;  %v507_v61 = vshra.s32 %v2796_v59, 16 }
 0x1a6   :  { %v349_v63 = vpop.xlane.xlu1 %348  ;;  %v351_v62 = vpop.xlane.xlu0 %350 }
 0x1a7   :  { %vm371_vm10 = vcmp.le.f32.partialorder %v2713_v3, %v349_v63  ;;  %vm372_vm11 = vcmp.le.f32.partialorder %v2715_v4, %v351_v62  ;;  %v2804_v0 = vcvt.s32.f32 %v493_v60  ;;  %v2806_v1 = vcvt.s32.f32 %v507_v61 }
 0x1a8   :  { %v2809_v2 = vsel %vm371_vm10, %v2734_v27, 128  ;;  %v2812_v5 = vsel %vm372_vm11, %v2734_v27, 128  ;;  %v436_v60 = vand.u32 65535, %v2761_v42  ;;  %v450_v61 = vand.u32 65535, %v2764_v43 }
 0x1a9   :  { %496 = vmin.xlane.f32.xlu1 %v2804_v0  ;;  %510 = vmin.xlane.f32.xlu0 %v2806_v1  ;;  %v521_v6 = vshra.s32 %v2809_v2, 16  ;;  %v535_v3 = vshra.s32 %v2812_v5, 16  ;;  %v464_v42 = vand.u32 65535, %v2777_v50  ;;  %v478_v43 = vand.u32 65535, %v2780_v51 }
 0x1aa   :  { %v353_v7 = vpop.xlane.xlu1 %352  ;;  %v355_v4 = vpop.xlane.xlu0 %354  ;;  %v492_v50 = vand.u32 65535, %v2793_v58  ;;  %v506_v51 = vand.u32 65535, %v2796_v59  ;;  %v520_v58 = vand.u32 65535, %v2809_v2  ;;  %v534_v59 = vand.u32 65535, %v2812_v5 }
 0x1ab   :  { %vm373_vm12 = vcmp.le.f32.partialorder %v2719_v9, %v353_v7  ;;  %vm374_vm13 = vcmp.le.f32.partialorder %v2721_v10, %v355_v4  ;;  %v2820_v8 = vcvt.s32.f32 %v521_v6  ;;  %v2822_v11 = vcvt.s32.f32 %v535_v3 }
 0x1ac   :  { %v2825_v12 = vsel %vm373_vm12, %v2734_v27, 128  ;;  %v2828_v13 = vsel %vm374_vm13, %v2734_v27, 128  ;;  %v438_v7 = vcvt.s32.f32 %v436_v60  ;;  %v452_v4 = vcvt.s32.f32 %v450_v61 }
 0x1ad   :  { %524 = vmin.xlane.f32.xlu1 %v2820_v8  ;;  %538 = vmin.xlane.f32.xlu0 %v2822_v11  ;;  %v549_v26 = vshra.s32 %v2825_v12, 16  ;;  %v563_v9 = vshra.s32 %v2828_v13, 16  ;;  %v548_v2 = vand.u32 65535, %v2825_v12  ;;  %v562_v5 = vand.u32 65535, %v2828_v13 }
 0x1ae   :  { %v357_v28 = vpop.xlane.xlu1 %356  ;;  %v359_v10 = vpop.xlane.xlu0 %358 }
 0x1af   :  { %vm375_vm14 = vcmp.le.f32.partialorder %v2725_v14, %v357_v28  ;;  %vm376_vm15 = vcmp.le.f32.partialorder %v2727_v15, %v359_v10  ;;  %v2836_v30 = vcvt.s32.f32 %v549_v26  ;;  %v2838_v31 = vcvt.s32.f32 %v563_v9 }
 0x1b0   :  { %v2841_v32 = vsel %vm375_vm14, %v2734_v27, 128  ;;  %v2844_v36 = vsel %vm376_vm15, %v2734_v27, 128  ;;  %v466_v28 = vcvt.s32.f32 %v464_v42  ;;  %v480_v10 = vcvt.s32.f32 %v478_v43 }
 0x1b1   :  { %552 = vmin.xlane.f32.xlu1 %v2836_v30  ;;  %566 = vmin.xlane.f32.xlu0 %v2838_v31  ;;  %v577_v37 = vshra.s32 %v2841_v32, 16  ;;  %v591_v14 = vshra.s32 %v2844_v36, 16  ;;  %v576_v12 = vand.u32 65535, %v2841_v32  ;;  %v590_v13 = vand.u32 65535, %v2844_v36 }
 0x1b2   :  { %v361_v38 = vpop.xlane.xlu1 %360  ;;  %v550_v61 = vcvt.s32.f32 %v548_v2 }
 0x1b3   :  { %vm377_vm1 = vcmp.le.f32.partialorder %v2731_v16, %v361_v38  ;;  %v2851_v15 = vcvt.s32.f32 %v577_v37  ;;  %v2853_v39 = vcvt.s32.f32 %v591_v14  ;;  %v408_v16 = vand.u32 65535, %v2746_v34 }
 0x1b4   :  { %v2856_v44 = vsel %vm377_vm1, %v2734_v27, 128  ;;  %v424_v34 = vcvt.s32.f32 %v422_v52  ;;  %v494_v38 = vcvt.s32.f32 %v492_v50  ;;  %v522_v52 = vcvt.s32.f32 %v520_v58  ;;  %v3000_v50 = vld [vmem:[%s3974_s1 + $0xc8] sm:$0xff] }
 0x1b5   :  { %580 = vmin.xlane.f32.xlu1 %v2851_v15  ;;  %594 = vmin.xlane.f32.xlu0 %v2853_v39  ;;  %v605_v45 = vshra.s32 %v2856_v44, 16  ;;  %v410_v29 = vcvt.s32.f32 %v408_v16  ;;  %v604_v32 = vand.u32 65535, %v2856_v44 }
 0x1b7   :  { %v2861_v46 = vcvt.s32.f32 %v605_v45  ;;  %v508_v45 = vcvt.s32.f32 %v506_v51  ;;  %v606_v43 = vcvt.s32.f32 %v604_v32  ;;  %v3009_v51 = vld [vmem:[%s3974_s1 + $0xc0] sm:$0xff] }
 0x1b9   :  { %608 = vmin.xlane.f32.xlu1 %v2861_v46 }
 0x222   :  { %v2867_v53 = vpop.xlane.xlu0 %398 }
 0x223   :  { %vm400_vm2 = vcmp.eq.f32.partialorder %v2743_v33, %v2867_v53 }
 0x224   :  { %v401_v55 = vsel %vm400_vm2, %v396_v54, inf  ;;  %v536_v54 = vcvt.s32.f32 %v534_v59 }
 0x225   :  { %402 = vmin.xlane.f32.xlu0 %v401_v55 }
 0x226   :  { %v2873_v63 = vpop.xlane.xlu1 %412  ;;  %v2875_v62 = vpop.xlane.xlu0 %426 }
 0x227   :  { %vm414_vm3 = vcmp.eq.f32.partialorder %v2756_v40, %v2873_v63  ;;  %vm428_vm4 = vcmp.eq.f32.partialorder %v2758_v41, %v2875_v62  ;;  %v433_v59 = vcvt.f32.s32 %v2875_v62 }
 0x228   :  { %v415_v35 = vsel %vm414_vm3, %v410_v29, inf  ;;  %v429_v33 = vsel %vm428_vm4, %v424_v34, inf  ;;  %v564_v29 = vcvt.s32.f32 %v562_v5 }
 0x229   :  { %416 = vmin.xlane.f32.xlu1 %v415_v35  ;;  %430 = vmin.xlane.f32.xlu0 %v429_v33  ;;  %v578_v35 = vcvt.s32.f32 %v576_v12  ;;  %v592_v33 = vcvt.s32.f32 %v590_v13  ;;  %v434_v5 = vshll.u32 %v433_v59, 16  ;;  %v3107_v59 = vld [vmem:[%s3974_s1 + $0x98] sm:$0xff] }
 0x22a   :  { %v2883_v6 = vpop.xlane.xlu1 %440  ;;  %v2885_v3 = vpop.xlane.xlu0 %454 }
 0x22b   :  { %vm442_vm5 = vcmp.eq.f32.partialorder %v2772_v48, %v2883_v6  ;;  %vm456_vm6 = vcmp.eq.f32.partialorder %v2774_v49, %v2885_v3 }
 0x22c   :  { %v443_v40 = vsel %vm442_vm5, %v438_v7, inf  ;;  %v457_v41 = vsel %vm456_vm6, %v452_v4, inf  ;;  %v3982_v7 = vmov 0.0   ;;  %v2973_v4 = vld [vmem:[%s3974_s1 + $0xe0] sm:$0xff] }
 0x22d   :  { %444 = vmin.xlane.f32.xlu1 %v443_v40  ;;  %458 = vmin.xlane.f32.xlu0 %v457_v41  ;;  %v2982_v40 = vld [vmem:[%s3974_s1 + $0xd8] sm:$0xff]  ;;  %v2991_v41 = vld [vmem:[%s3974_s1 + $0xd0] sm:$0xff] }
 0x22e   :  { %v2893_v26 = vpop.xlane.xlu1 %468  ;;  %v2895_v9 = vpop.xlane.xlu0 %482  ;;  %2288 = vmatprep.subr.mxu1 %v3982_v7 }
 0x22f   :  { %vm470_vm7 = vcmp.eq.f32.partialorder %v2788_v56, %v2893_v26  ;;  %vm484_vm8 = vcmp.eq.f32.partialorder %v2790_v57, %v2895_v9 }
 0x230   :  { %v471_v48 = vsel %vm470_vm7, %v466_v28, inf  ;;  %v485_v49 = vsel %vm484_vm8, %v480_v10, inf  ;;  %v405_v28 = vcvt.f32.s32 %v2867_v53  ;;  %v3019_v10 = vld [vmem:[%s3974_s1 + $0xb8] sm:$0xff] }
 0x231   :  { %472 = vmin.xlane.f32.xlu1 %v471_v48  ;;  %486 = vmin.xlane.f32.xlu0 %v485_v49  ;;  %v419_v48 = vcvt.f32.s32 %v2873_v63  ;;  %v447_v63 = vcvt.f32.s32 %v2883_v6 }
 0x232   :  { %v2903_v37 = vpop.xlane.xlu1 %496  ;;  %v2905_v14 = vpop.xlane.xlu0 %510  ;;  %v406_v58 = vshll.u32 %v405_v28, 16 }
 0x233   :  { %vm498_vm9 = vcmp.eq.f32.partialorder %v2804_v0, %v2903_v37  ;;  %vm512_vm10 = vcmp.eq.f32.partialorder %v2806_v1, %v2905_v14  ;;  %v448_v12 = vshll.u32 %v447_v63, 16 }
 0x234   :  { %v499_v56 = vsel %vm498_vm9, %v494_v38, inf  ;;  %v513_v57 = vsel %vm512_vm10, %v508_v45, inf  ;;  %v3032_v45 = vld [vmem:[%s3974_s1 + $0xb0] sm:$0xff] }
 0x235   :  { %500 = vmin.xlane.f32.xlu1 %v499_v56  ;;  %514 = vmin.xlane.f32.xlu0 %v513_v57  ;;  %v420_v56 = vshll.u32 %v419_v48, 16  ;;  %v461_v57 = vcvt.f32.s32 %v2885_v3 }
 0x236   :  { %v2913_v47 = vpop.xlane.xlu1 %524  ;;  %v2915_v16 = vpop.xlane.xlu0 %538 }
 0x237   :  { %vm526_vm11 = vcmp.eq.f32.partialorder %v2820_v8, %v2913_v47  ;;  %vm540_vm12 = vcmp.eq.f32.partialorder %v2822_v11, %v2915_v16  ;;  %v462_v13 = vshll.u32 %v461_v57, 16  ;;  %v531_v63 = vcvt.f32.s32 %v2913_v47 }
 0x238   :  { %v527_v0 = vsel %vm526_vm11, %v522_v52, inf  ;;  %v541_v1 = vsel %vm540_vm12, %v536_v54, inf  ;;  %v545_v57 = vcvt.f32.s32 %v2915_v16 }
 0x239   :  { %528 = vmin.xlane.f32.xlu1 %v527_v0  ;;  %542 = vmin.xlane.f32.xlu0 %v541_v1  ;;  %v3980_v0 = vmov 1.0   ;;  %v3053_v1 = vld [vmem:[%s3974_s1 + $0xa8] sm:$0xff] }
 0x23a   :  { %v2923_v55 = vpop.xlane.xlu1 %552  ;;  %v2925_v60 = vpop.xlane.xlu0 %566 }
 0x23b   :  { %vm554_vm13 = vcmp.eq.f32.partialorder %v2836_v30, %v2923_v55  ;;  %vm568_vm14 = vcmp.eq.f32.partialorder %v2838_v31, %v2925_v60 }
 0x23c   :  { %v555_v8 = vsel %vm554_vm13, %v550_v61, inf  ;;  %v569_v11 = vsel %vm568_vm14, %v564_v29, inf  ;;  %v475_v61 = vcvt.f32.s32 %v2893_v26  ;;  %v489_v29 = vcvt.f32.s32 %v2895_v9 }
 0x23d   :  { %556 = vmin.xlane.f32.xlu1 %v555_v8  ;;  %570 = vmin.xlane.f32.xlu0 %v569_v11 }
 0x23e   :  { %v2932_v34 = vpop.xlane.xlu1 %580  ;;  %v2934_v36 = vpop.xlane.xlu0 %594 }
 0x23f   :  { %vm582_vm15 = vcmp.eq.f32.partialorder %v2851_v15, %v2932_v34  ;;  %vm596_vm1 = vcmp.eq.f32.partialorder %v2853_v39, %v2934_v36  ;;  %v2948_v15 = vld [vmem:[%s3974_s1 + $0xf8] sm:$0xff]  ;;  %v2953_v39 = vld [vmem:[%s3974_s1 + $0xf0] sm:$0xff] }
 0x240   :  { %v583_v30 = vsel %vm582_vm15, %v578_v35, inf  ;;  %v597_v31 = vsel %vm596_vm1, %v592_v33, inf  ;;  %2323 = vmatprep.subr.msk.mxu0 %vm3990_vm0, %v2948_v15  ;;  %v3080_v33 = vld [vmem:[%s3974_s1 + $0xa0] sm:$0xff] }
 0x241   :  { %584 = vmin.xlane.f32.xlu1 %v583_v30  ;;  %598 = vmin.xlane.f32.xlu0 %v597_v31  ;;  %v476_v30 = vshll.u32 %v475_v61, 16  ;;  %v490_v31 = vshll.u32 %v489_v29, 16  ;;  %v559_v61 = vcvt.f32.s32 %v2923_v55  ;;  %v573_v29 = vcvt.f32.s32 %v2925_v60 }
 0x242   :  { %v2940_v42 = vpop.xlane.xlu1 %608  ;;  %2324 = vmatpush3.xpose.msk.msra.mxu0 %vm3990_vm0, %v2948_v15 }
 0x243   :  { %vm610_vm2 = vcmp.eq.f32.partialorder %v2861_v46, %v2940_v42  ;;  %2325 = vmatprep.subr.msk.mxu0 %vm3990_vm0, %v2953_v39  ;;  %v2964_v46 = vld [vmem:[%s3974_s1 + $0xe8] sm:$0xff] }
 0x244   :  { %v611_v44 = vsel %vm610_vm2, %v606_v43, inf  ;;  %v503_v43 = vcvt.f32.s32 %v2903_v37 }
 0x245   :  { %612 = vmin.xlane.f32.xlu1 %v611_v44  ;;  %v517_v44 = vcvt.f32.s32 %v2905_v14 }
 0x246   :  { %2326 = vmatpush3.xpose.msk.msra.mxu0 %vm3990_vm0, %v2953_v39 }
 0x247   :  { %2327 = vmatprep.subr.msk.mxu0 %vm3990_vm0, %v2964_v46 }
 0x24a   :  { %2328 = vmatpush3.xpose.msk.msra.mxu0 %vm3990_vm0, %v2964_v46 }
 0x24b   :  { %2329 = vmatprep.subr.msk.mxu0 %vm3990_vm0, %v2973_v4 }
 0x24e   :  { %2330 = vmatpush3.xpose.msk.msra.mxu0 %vm3990_vm0, %v2973_v4 }
 0x24f   :  { %2331 = vmatprep.subr.msk.mxu0 %vm3990_vm0, %v2982_v40 }
 0x252   :  { %2332 = vmatpush3.xpose.msk.msra.mxu0 %vm3990_vm0, %v2982_v40 }
 0x253   :  { %2333 = vmatprep.subr.msk.mxu0 %vm3990_vm0, %v2991_v41 }
 0x256   :  { %2334 = vmatpush3.xpose.msk.msra.mxu0 %vm3990_vm0, %v2991_v41 }
 0x257   :  { %2335 = vmatprep.subr.msk.mxu0 %vm3990_vm0, %v3000_v50 }
 0x25a   :  { %2336 = vmatpush3.xpose.msk.msra.mxu0 %vm3990_vm0, %v3000_v50 }
 0x25b   :  { %2337 = vmatprep.subr.msk.mxu0 %vm3990_vm0, %v3009_v51 }
 0x25e   :  { %2338 = vmatpush3.xpose.msk.msra.mxu0 %vm3990_vm0, %v3009_v51 }
 0x25f   :  { %2339 = vmatprep.subr.msk.mxu0 %vm3990_vm0, %v3019_v10 }
 0x262   :  { %2340 = vmatpush3.xpose.msk.msra.mxu0 %vm3990_vm0, %v3019_v10 }
 0x263   :  { %2341 = vmatprep.subr.msk.mxu0 %vm3990_vm0, %v3032_v45 }
 0x266   :  { %2342 = vmatpush3.xpose.msk.msra.mxu0 %vm3990_vm0, %v3032_v45 }
 0x267   :  { %2343 = vmatprep.subr.msk.mxu0 %vm3990_vm0, %v3053_v1 }
 0x26a   :  { %2344 = vmatpush3.xpose.msk.msra.mxu0 %vm3990_vm0, %v3053_v1 }
 0x26b   :  { %2345 = vmatprep.subr.msk.mxu0 %vm3990_vm0, %v3080_v33 }
 0x26e   :  { %2346 = vmatpush3.xpose.msk.msra.mxu0 %vm3990_vm0, %v3080_v33 }
 0x26f   :  { %2347 = vmatprep.subr.msk.mxu0 %vm3990_vm0, %v3107_v59 }
 0x272   :  { %2348 = vmatpush3.xpose.msk.msra.mxu0 %vm3990_vm0, %v3107_v59 }
 0x2ae   :  { %v403_v49 = vpop.xlane.xlu0 %402 }
 0x2af   :  { %v404_v38 = vcvt.f32.s32 %v403_v49 }
 0x2b1   :  { %v3027_v53 = vadd.s32 %v406_v58, %v404_v38  ;;  %v504_v38 = vshll.u32 %v503_v43, 16  ;;  %v574_v43 = vshll.u32 %v573_v29, 16 }
 0x2b2   :  { %v417_v62 = vpop.xlane.xlu1 %416  ;;  %v431_v2 = vpop.xlane.xlu0 %430 }
 0x2b3   :  { %v418_v52 = vcvt.f32.s32 %v417_v62  ;;  %v432_v54 = vcvt.f32.s32 %v431_v2  ;;  %vm3979_vm3 = vcmp.eq.s32.totalorder %v2734_v27, %v3027_v53 }
 0x2b4   :  { %2264 = vmatprep.mubr.msk.f32.mxu1 %vm3979_vm3, %v3980_v0 }
 0x2b5   :  { %v3046_v6 = vadd.s32 %v420_v56, %v418_v52  ;;  %v3048_v3 = vadd.s32 %v434_v5, %v432_v54  ;;  %v518_v56 = vshll.u32 %v517_v44, 16  ;;  %v3134_v54 = vld [vmem:[%s3974_s1 + $0x90] sm:$0xff]  ;;  %v587_v44 = vcvt.f32.s32 %v2932_v34 }
 0x2b6   :  { %v445_v8 = vpop.xlane.xlu1 %444  ;;  %v459_v11 = vpop.xlane.xlu0 %458  ;;  %2349 = vmatprep.subr.msk.mxu0 %vm3990_vm0, %v3134_v54 }
 0x2b7   :  { %v446_v32 = vcvt.f32.s32 %v445_v8  ;;  %v460_v35 = vcvt.f32.s32 %v459_v11  ;;  %vm619_vm4 = vcmp.eq.s32.totalorder %v2734_v27, %v3046_v6  ;;  %vm620_vm5 = vcmp.eq.s32.totalorder %v2734_v27, %v3048_v3  ;;  %2350 = vmatpush3.xpose.msk.msra.mxu0 %vm3990_vm0, %v3134_v54  ;;  %v2477_v6 = vld [vmem:[%s3975_s0] sm:$0xff] }
 0x2b8   :  { %2265 = vmatmul.mubr.msk.f32.vlgmr.msra.gmra.mxu1 %vm619_vm4, %v3980_v0 }
 0x2b9   :  { %v3069_v26 = vadd.s32 %v448_v12, %v446_v32  ;;  %v3071_v9 = vadd.s32 %v462_v13, %v460_v35  ;;  %2267 = vmatprep.mubr.msk.f32.mxu1 %vm620_vm5, %v3980_v0  ;;  %v532_v12 = vshll.u32 %v531_v63, 16  ;;  %v546_v13 = vshll.u32 %v545_v57, 16 }
 0x2ba   :  { %v473_v28 = vpop.xlane.xlu1 %472  ;;  %v487_v48 = vpop.xlane.xlu0 %486  ;;  %v615_v57 = vcvt.f32.s32 %v2940_v42 }
 0x2bb   :  { %v474_v49 = vcvt.f32.s32 %v473_v28  ;;  %v488_v58 = vcvt.f32.s32 %v487_v48  ;;  %vm621_vm6 = vcmp.eq.s32.totalorder %v2734_v27, %v3069_v26  ;;  %vm622_vm7 = vcmp.eq.s32.totalorder %v2734_v27, %v3071_v9 }
 0x2bc   :  { %2268 = vmatmul.mubr.msk.f32.gmra.mxu1 %vm621_vm6, %v3980_v0  ;;  %v601_v28 = vcvt.f32.s32 %v2934_v36 }
 0x2bd   :  { %v3096_v37 = vadd.s32 %v476_v30, %v474_v49  ;;  %v3098_v14 = vadd.s32 %v490_v31, %v488_v58  ;;  %2270 = vmatprep.mubr.msk.f32.mxu1 %vm622_vm7, %v3980_v0  ;;  %v3157_v30 = vld [vmem:[%s3974_s1 + $0x88] sm:$0xff]  ;;  %v560_v31 = vshll.u32 %v559_v61, 16  ;;  %v616_v61 = vshll.u32 %v615_v57, 16 }
 0x2be   :  { %v501_v62 = vpop.xlane.xlu1 %500  ;;  %v515_v2 = vpop.xlane.xlu0 %514  ;;  %2351 = vmatprep.subr.msk.mxu0 %vm3990_vm0, %v3157_v30  ;;  %v602_v63 = vshll.u32 %v601_v28, 16  ;;  %v2479_v28 = vld [vmem:[%s3975_s0 + $0x58] sm:$0xff] }
 0x2bf   :  { %v502_v5 = vcvt.f32.s32 %v501_v62  ;;  %v516_v52 = vcvt.f32.s32 %v515_v2  ;;  %vm623_vm8 = vcmp.eq.s32.totalorder %v2734_v27, %v3096_v37  ;;  %vm624_vm9 = vcmp.eq.s32.totalorder %v2734_v27, %v3098_v14  ;;  %2352 = vmatpush3.xpose.msk.msra.mxu0 %vm3990_vm0, %v3157_v30 }
 0x2c0   :  { %2271 = vmatmul.mubr.msk.f32.gmra.mxu1 %vm623_vm8, %v3980_v0 }
 0x2c1   :  { %v3123_v47 = vadd.s32 %v504_v38, %v502_v5  ;;  %v3125_v16 = vadd.s32 %v518_v56, %v516_v52  ;;  %2273 = vmatprep.mubr.msk.f32.mxu1 %vm624_vm9, %v3980_v0  ;;  %v588_v56 = vshll.u32 %v587_v44, 16  ;;  %v2478_v44 = vld [vmem:[%s3975_s0 + $0x50] sm:$0xff] }
 0x2c2   :  { %v529_v8 = vpop.xlane.xlu1 %528  ;;  %v543_v11 = vpop.xlane.xlu0 %542 }
 0x2c3   :  { %v530_v32 = vcvt.f32.s32 %v529_v8  ;;  %v544_v35 = vcvt.f32.s32 %v543_v11  ;;  %vm625_vm10 = vcmp.eq.s32.totalorder %v2734_v27, %v3123_v47  ;;  %vm626_vm11 = vcmp.eq.s32.totalorder %v2734_v27, %v3125_v16  ;;  %v3230_v16 = vld [vmem:[%s3974_s1 + $0x80] sm:$0xff] }
 0x2c4   :  { %2274 = vmatmul.mubr.msk.f32.gmra.mxu1 %vm625_vm10, %v3980_v0  ;;  %2353 = vmatprep.subr.msk.mxu0 %vm3990_vm0, %v3230_v16 }
 0x2c5   :  { %v533_v55 = vadd.s32 %v532_v12, %v530_v32  ;;  %v547_v60 = vadd.s32 %v546_v13, %v544_v35  ;;  %2276 = vmatprep.mubr.msk.f32.mxu1 %vm626_vm11, %v3980_v0  ;;  %2354 = vmatpush3.xpose.msk.msra.mxu0 %vm3990_vm0, %v3230_v16 }
 0x2c6   :  { %v557_v48 = vpop.xlane.xlu1 %556  ;;  %v571_v49 = vpop.xlane.xlu0 %570  ;;  %2435 = vmatprep.subr.mxu0 %v3982_v7 }
 0x2c7   :  { %v558_v58 = vcvt.f32.s32 %v557_v48  ;;  %v572_v38 = vcvt.f32.s32 %v571_v49  ;;  %vm627_vm12 = vcmp.eq.s32.totalorder %v2734_v27, %v533_v55  ;;  %vm628_vm13 = vcmp.eq.s32.totalorder %v2734_v27, %v547_v60 }
 0x2c8   :  { %2277 = vmatmul.mubr.msk.f32.gmra.mxu1 %vm627_vm12, %v3980_v0 }
 0x2c9   :  { %v561_v34 = vadd.s32 %v560_v31, %v558_v58  ;;  %v575_v36 = vadd.s32 %v574_v43, %v572_v38  ;;  %2279 = vmatprep.mubr.msk.f32.mxu1 %vm628_vm13, %v3980_v0  ;;  %v2480_v38 = vld [vmem:[%s3975_s0 + $0x60] sm:$0xff] }
 0x2ca   :  { %v585_v62 = vpop.xlane.xlu1 %584  ;;  %v599_v2 = vpop.xlane.xlu0 %598 }
 0x2cb   :  { %v586_v5 = vcvt.f32.s32 %v585_v62  ;;  %v600_v52 = vcvt.f32.s32 %v599_v2  ;;  %vm629_vm14 = vcmp.eq.s32.totalorder %v2734_v27, %v561_v34  ;;  %vm630_vm15 = vcmp.eq.s32.totalorder %v2734_v27, %v575_v36  ;;  %v2481_v36 = vld [vmem:[%s3975_s0 + $0x68] sm:$0xff]  ;;  %v2482_v62 = vld [vmem:[%s3975_s0 + $0x70] sm:$0xff] }
 0x2cc   :  { %2280 = vmatmul.mubr.msk.f32.gmra.mxu1 %vm629_vm14, %v3980_v0 }
 0x2cd   :  { %v589_v12 = vadd.s32 %v588_v56, %v586_v5  ;;  %v603_v13 = vadd.s32 %v602_v63, %v600_v52  ;;  %2282 = vmatprep.mubr.msk.f32.mxu1 %vm630_vm15, %v3980_v0  ;;  %v2483_v5 = vld [vmem:[%s3975_s0 + $0x78] sm:$0xff] }
 0x2ce   :  { %v613_v42 = vpop.xlane.xlu1 %612 }
 0x2cf   :  { %v614_v29 = vcvt.f32.s32 %v613_v42  ;;  %vm631_vm1 = vcmp.eq.s32.totalorder %v2734_v27, %v589_v12  ;;  %vm632_vm2 = vcmp.eq.s32.totalorder %v2734_v27, %v603_v13 }
 0x2d0   :  { %2283 = vmatmul.mubr.msk.f32.gmra.mxu1 %vm631_vm1, %v3980_v0 }
 0x2d1   :  { %v617_v8 = vadd.s32 %v616_v61, %v614_v29  ;;  %2285 = vmatprep.mubr.msk.f32.mxu1 %vm632_vm2, %v3980_v0 }
 0x2d3   :  { %vm633_vm3 = vcmp.eq.s32.totalorder %v2734_v27, %v617_v8 }
 0x2d4   :  { %2286 = vmatmul.mubr.msk.f32.gmra.mxu1 %vm633_vm3, %v3980_v0 }
 0x2d5   :  { %2289 = vmatpush3.xpose.msk.msra.mxu1 %vm633_vm3, %v3980_v0  ;;  %vm3991_vm3 = vcmp.eq.s32.totalorder %v2734_v27, %v3027_v53 }
 0x2d6   :  { %2290 = vmatprep.subr.mxu1 %v3982_v7 }
 0x2d9   :  { %2291 = vmatpush3.xpose.msk.msra.mxu1 %vm632_vm2, %v3980_v0 }
 0x2da   :  { %2292 = vmatprep.subr.mxu1 %v3982_v7 }
 0x2dd   :  { %2293 = vmatpush3.xpose.msk.msra.mxu1 %vm631_vm1, %v3980_v0 }
 0x2de   :  { %2294 = vmatprep.subr.mxu1 %v3982_v7 }
 0x2e1   :  { %2295 = vmatpush3.xpose.msk.msra.mxu1 %vm630_vm15, %v3980_v0 }
 0x2e2   :  { %2296 = vmatprep.subr.mxu1 %v3982_v7 }
 0x2e5   :  { %2297 = vmatpush3.xpose.msk.msra.mxu1 %vm629_vm14, %v3980_v0 }
 0x2e6   :  { %2298 = vmatprep.subr.mxu1 %v3982_v7 }
 0x2e9   :  { %2299 = vmatpush3.xpose.msk.msra.mxu1 %vm628_vm13, %v3980_v0 }
 0x2ea   :  { %2300 = vmatprep.subr.mxu1 %v3982_v7 }
 0x2ed   :  { %2301 = vmatpush3.xpose.msk.msra.mxu1 %vm627_vm12, %v3980_v0 }
 0x2ee   :  { %2302 = vmatprep.subr.mxu1 %v3982_v7 }
 0x2f1   :  { %2303 = vmatpush3.xpose.msk.msra.mxu1 %vm626_vm11, %v3980_v0 }
 0x2f2   :  { %2304 = vmatprep.subr.mxu1 %v3982_v7 }
 0x2f5   :  { %2305 = vmatpush3.xpose.msk.msra.mxu1 %vm625_vm10, %v3980_v0 }
 0x2f6   :  { %2306 = vmatprep.subr.mxu1 %v3982_v7 }
 0x2f9   :  { %2307 = vmatpush3.xpose.msk.msra.mxu1 %vm624_vm9, %v3980_v0 }
 0x2fa   :  { %2308 = vmatprep.subr.mxu1 %v3982_v7 }
 0x2fd   :  { %2309 = vmatpush3.xpose.msk.msra.mxu1 %vm623_vm8, %v3980_v0 }
 0x2fe   :  { %2310 = vmatprep.subr.mxu1 %v3982_v7 }
 0x301   :  { %2311 = vmatpush3.xpose.msk.msra.mxu1 %vm622_vm7, %v3980_v0 }
 0x302   :  { %2312 = vmatprep.subr.mxu1 %v3982_v7 }
 0x305   :  { %2313 = vmatpush3.xpose.msk.msra.mxu1 %vm621_vm6, %v3980_v0 }
 0x306   :  { %2314 = vmatprep.subr.mxu1 %v3982_v7 }
 0x309   :  { %2315 = vmatpush3.xpose.msk.msra.mxu1 %vm620_vm5, %v3980_v0 }
 0x30a   :  { %2316 = vmatprep.subr.mxu1 %v3982_v7 }
 0x30d   :  { %2317 = vmatpush3.xpose.msk.msra.mxu1 %vm619_vm4, %v3980_v0 }
 0x30e   :  { %2318 = vmatprep.subr.mxu1 %v3982_v7 }
 0x311   :  { %2319 = vmatpush3.xpose.msk.msra.mxu1 %vm3991_vm3, %v3980_v0 }
 0x312   :  { %2379 = vmatprep.subr.mxu1 %v2948_v15 }
 0x378   :  { %v3267_v26 = vpop.f32.mrf.mxu1 }
 0x379   :  { %844 = vst.msk [vmem:[%s3977_s3 + $0x8] sm:$0xff] %vm3990_vm0, %v3267_v26  ;;  %v828_v53 = vsub.f32 %v2599_v17, %v3267_v26 }
 0x37a   :  { %v3274_v3 = vpop.f32.mrf.mxu1 }
 0x37b   :  { %v827_v9 = vsub.f32 %v2477_v6, %v3274_v3  ;;  %843 = vst.msk [vmem:[%s3977_s3] sm:$0xff] %vm3990_vm0, %v3274_v3 }
 0x37c   :  { %v3287_v37 = vpop.f32.mrf.mxu1 }
 0x37d   :  { %846 = vst.msk [vmem:[%s3977_s3 + $0x18] sm:$0xff] %vm3990_vm0, %v3287_v37  ;;  %2355 = vmatprep.mubr.msk.f32.mxu0 %vm3990_vm0, %v827_v9  ;;  %v830_v17 = vsub.f32 %v2613_v19, %v3287_v37 }
 0x37e   :  { %v3295_v14 = vpop.f32.mrf.mxu1  ;;  %2356 = vmatmul.mubr.msk.f32.vlgmr.msra.gmra.mxu0 %vm3990_vm0, %v828_v53 }
 0x37f   :  { %v829_v47 = vsub.f32 %v2604_v18, %v3295_v14  ;;  %845 = vst.msk [vmem:[%s3977_s3 + $0x10] sm:$0xff] %vm3990_vm0, %v3295_v14 }
 0x380   :  { %v3307_v11 = vpop.f32.mrf.mxu1 }
 0x381   :  { %848 = vst.msk [vmem:[%s3977_s3 + $0x28] sm:$0xff] %vm3990_vm0, %v3307_v11  ;;  %2358 = vmatprep.mubr.msk.f32.mxu0 %vm3990_vm0, %v829_v47  ;;  %v832_v19 = vsub.f32 %v2627_v21, %v3307_v11 }
 0x382   :  { %v3315_v18 = vpop.f32.mrf.mxu1  ;;  %2359 = vmatmul.mubr.msk.f32.gmra.mxu0 %vm3990_vm0, %v830_v17 }
 0x383   :  { %v831_v32 = vsub.f32 %v2618_v20, %v3315_v18  ;;  %847 = vst.msk [vmem:[%s3977_s3 + $0x20] sm:$0xff] %vm3990_vm0, %v3315_v18 }
 0x384   :  { %v3327_v35 = vpop.f32.mrf.mxu1 }
 0x385   :  { %850 = vst.msk [vmem:[%s3977_s3 + $0x38] sm:$0xff] %vm3990_vm0, %v3327_v35  ;;  %2361 = vmatprep.mubr.msk.f32.mxu0 %vm3990_vm0, %v831_v32  ;;  %v834_v21 = vsub.f32 %v2641_v23, %v3327_v35 }
 0x386   :  { %v3335_v20 = vpop.f32.mrf.mxu1  ;;  %2362 = vmatmul.mubr.msk.f32.gmra.mxu0 %vm3990_vm0, %v832_v19 }
 0x387   :  { %v833_v55 = vsub.f32 %v2632_v22, %v3335_v20  ;;  %849 = vst.msk [vmem:[%s3977_s3 + $0x30] sm:$0xff] %vm3990_vm0, %v3335_v20 }
 0x388   :  { %v3347_v60 = vpop.f32.mrf.mxu1 }
 0x389   :  { %852 = vst.msk [vmem:[%s3977_s3 + $0x48] sm:$0xff] %vm3990_vm0, %v3347_v60  ;;  %2364 = vmatprep.mubr.msk.f32.mxu0 %vm3990_vm0, %v833_v55  ;;  %v836_v23 = vsub.f32 %v2655_v25, %v3347_v60 }
 0x38a   :  { %v3355_v22 = vpop.f32.mrf.mxu1  ;;  %2365 = vmatmul.mubr.msk.f32.gmra.mxu0 %vm3990_vm0, %v834_v21 }
 0x38b   :  { %v835_v31 = vsub.f32 %v2646_v24, %v3355_v22  ;;  %851 = vst.msk [vmem:[%s3977_s3 + $0x40] sm:$0xff] %vm3990_vm0, %v3355_v22 }
 0x38c   :  { %v3367_v43 = vpop.f32.mrf.mxu1 }
 0x38d   :  { %3992 = vst [vmem:[#allocation2_spill] sm:$0xff] %v3367_v43  ;;  %854 = vst.msk [vmem:[%s3977_s3 + $0x58] sm:$0xff] %vm3990_vm0, %v3367_v43  ;;  %2367 = vmatprep.mubr.msk.f32.mxu0 %vm3990_vm0, %v835_v31  ;;  %v838_v48 = vsub.f32 %v2479_v28, %v3367_v43 }
 0x38e   :  { %v3375_v24 = vpop.f32.mrf.mxu1  ;;  %2368 = vmatmul.mubr.msk.f32.gmra.mxu0 %vm3990_vm0, %v836_v23 }
 0x38f   :  { %3993 = vst [vmem:[#allocation3_spill] sm:$0xff] %v3375_v24  ;;  %v837_v25 = vsub.f32 %v2478_v44, %v3375_v24  ;;  %853 = vst.msk [vmem:[%s3977_s3 + $0x50] sm:$0xff] %vm3990_vm0, %v3375_v24  ;;  %v1949_v44 = vld [vmem:[%s3976_s2 + $0x1] ss:$0 sm:$0xff] }
 0x390   :  { %v3391_v49 = vpop.f32.mrf.mxu1 }
 0x391   :  { %3994 = vst [vmem:[#allocation4_spill] sm:$0xff] %v3391_v49  ;;  %856 = vst.msk [vmem:[%s3977_s3 + $0x68] sm:$0xff] %vm3990_vm0, %v3391_v49  ;;  %2370 = vmatprep.mubr.msk.f32.mxu0 %vm3990_vm0, %v837_v25  ;;  %v840_v56 = vsub.f32 %v2481_v36, %v3391_v49 }
 0x392   :  { %v3399_v58 = vpop.f32.mrf.mxu1  ;;  %2371 = vmatmul.mubr.msk.f32.gmra.mxu0 %vm3990_vm0, %v838_v48 }
 0x393   :  { %3995 = vst [vmem:[#allocation5_spill] sm:$0xff] %v3399_v58  ;;  %v839_v34 = vsub.f32 %v2480_v38, %v3399_v58  ;;  %855 = vst.msk [vmem:[%s3977_s3 + $0x60] sm:$0xff] %vm3990_vm0, %v3399_v58 }
 0x394   :  { %v3415_v63 = vpop.f32.mrf.mxu1 }
 0x395   :  { %3996 = vst [vmem:[#allocation6_spill] sm:$0xff] %v3415_v63  ;;  %858 = vst.msk [vmem:[%s3977_s3 + $0x78] sm:$0xff] %vm3990_vm0, %v3415_v63  ;;  %2373 = vmatprep.mubr.msk.f32.mxu0 %vm3990_vm0, %v839_v34  ;;  %v842_v52 = vsub.f32 %v2483_v5, %v3415_v63 }
 0x396   :  { %v3423_v57 = vpop.f32.mrf.mxu1  ;;  %2374 = vmatmul.mubr.msk.f32.gmra.mxu0 %vm3990_vm0, %v840_v56 }
 0x397   :  { %3997 = vst [vmem:[#allocation7_spill] sm:$0xff] %v3423_v57  ;;  %v841_v2 = vsub.f32 %v2482_v62, %v3423_v57  ;;  %857 = vst.msk [vmem:[%s3977_s3 + $0x70] sm:$0xff] %vm3990_vm0, %v3423_v57 }
 0x399   :  { %2376 = vmatprep.mubr.msk.f32.mxu0 %vm3990_vm0, %v841_v2 }
 0x39a   :  { %2377 = vmatmul.mubr.msk.f32.gmra.mxu0 %vm3990_vm0, %v842_v52 }
 0x43e   :  { %v2357_v12 = vpop.f32.mrf.mxu0 }
 0x440   :  { %v1111_v13 = vpop.f32.mrf.mxu0 }
 0x442   :  { %v2360_v42 = vpop.f32.mrf.mxu0 }
 0x444   :  { %v1121_v61 = vpop.f32.mrf.mxu0 }
 0x446   :  { %v2363_v29 = vpop.f32.mrf.mxu0 }
 0x448   :  { %v1131_v8 = vpop.f32.mrf.mxu0 }
 0x44a   :  { %v2366_v6 = vpop.f32.mrf.mxu0 }
 0x44b   :  { %v1197_v7 = vmul.f32 2.0, %v2366_v6 }
 0x44c   :  { %v1141_v9 = vpop.f32.mrf.mxu0 }
 0x44e   :  { %v2369_v53 = vpop.f32.mrf.mxu0 }
 0x44f   :  { %v1199_v5 = vmul.f32 2.0, %v2369_v53  ;;  %v1196_v53 = vmul.f32 2.0, %v1141_v9  ;;  %v1194_v9 = vmul.f32 2.0, %v1131_v8 }
 0x450   :  { %v1151_v47 = vpop.f32.mrf.mxu0 }
 0x452   :  { %v2372_v17 = vpop.f32.mrf.mxu0 }
 0x453   :  { %v1201_v36 = vmul.f32 2.0, %v2372_v17  ;;  %v1191_v17 = vmul.f32 2.0, %v2357_v12  ;;  %v1195_v12 = vmul.f32 2.0, %v2363_v29 }
 0x454   :  { %v1161_v32 = vpop.f32.mrf.mxu0 }
 0x455   :  { %v1200_v62 = vmul.f32 2.0, %v1161_v32  ;;  %v1221_v52 = vsub.f32 %v1949_v44, %v1201_v36  ;;  %v3450_v32 = vsub.f32 %v1949_v44, %v1197_v7  ;;  %v3456_v6 = vsub.f32 %v1949_v44, %v1191_v17 }
 0x456   :  { %v2375_v19 = vpop.f32.mrf.mxu0 }
 0x457   :  { %v1203_v25 = vmul.f32 2.0, %v2375_v19  ;;  %v1220_v0 = vsub.f32 %v1949_v44, %v1200_v62  ;;  %v3444_v19 = vsub.f32 %v1949_v44, %v1199_v5 }
 0x458   :  { %v1171_v55 = vpop.f32.mrf.mxu0 }
 0x459   :  { %v1202_v38 = vmul.f32 2.0, %v1171_v55  ;;  %v1223_v56 = vsub.f32 %v1949_v44, %v1203_v25  ;;  %v3459_v25 = vsub.f32 %v1949_v44, %v1196_v53 }
 0x45a   :  { %v2378_v21 = vpop.f32.mrf.mxu0 }
 0x45b   :  { %v1205_v31 = vmul.f32 2.0, %v2378_v21  ;;  %v1222_v2 = vsub.f32 %v1949_v44, %v1202_v38  ;;  %v1198_v21 = vmul.f32 2.0, %v1151_v47 }
 0x45c   :  { %v1181_v23 = vpop.f32.mrf.mxu0 }
 0x45d   :  { %v1204_v28 = vmul.f32 2.0, %v1181_v23  ;;  %v1225_v48 = vsub.f32 %v1949_v44, %v1205_v31  ;;  %v1190_v31 = vmul.f32 2.0, %v1111_v13  ;;  %v3447_v55 = vsub.f32 %v1949_v44, %v1198_v21 }
 0x45e   :  { %v1192_v23 = vmul.f32 2.0, %v1121_v61  ;;  %v1193_v13 = vmul.f32 2.0, %v2360_v42  ;;  %v3468_v61 = vsub.f32 %v1949_v44, %v1195_v12  ;;  %v3471_v42 = vsub.f32 %v1949_v44, %v1194_v9 }
 0x45f   :  { %1256 = vmin.xlane.f32.xlu0 %v1225_v48  ;;  %v1224_v34 = vsub.f32 %v1949_v44, %v1204_v28  ;;  %v3453_v47 = vsub.f32 %v1949_v44, %v1190_v31 }
 0x460   :  { %v3462_v7 = vsub.f32 %v1949_v44, %v1192_v23  ;;  %v3465_v28 = vsub.f32 %v1949_v44, %v1193_v13 }
 0x461   :  { %1254 = vmin.xlane.f32.xlu1 %v1224_v34 }
 0x463   :  { %1252 = vmin.xlane.f32.xlu0 %v1223_v56 }
 0x465   :  { %1250 = vmin.xlane.f32.xlu1 %v1222_v2 }
 0x467   :  { %1248 = vmin.xlane.f32.xlu0 %v1221_v52 }
 0x469   :  { %1246 = vmin.xlane.f32.xlu1 %v1220_v0 }
 0x46b   :  { %1244 = vmin.xlane.f32.xlu0 %v3444_v19 }
 0x46d   :  { %1242 = vmin.xlane.f32.xlu1 %v3447_v55 }
 0x46f   :  { %1240 = vmin.xlane.f32.xlu0 %v3450_v32 }
 0x471   :  { %1226 = vmin.xlane.f32.xlu1 %v3453_v47 }
 0x473   :  { %1228 = vmin.xlane.f32.xlu0 %v3456_v6 }
 0x475   :  { %1238 = vmin.xlane.f32.xlu1 %v3459_v25 }
 0x477   :  { %1230 = vmin.xlane.f32.xlu0 %v3462_v7 }
 0x479   :  { %1232 = vmin.xlane.f32.xlu1 %v3465_v28 }
 0x47b   :  { %1236 = vmin.xlane.f32.xlu0 %v3468_v61 }
 0x47d   :  { %1234 = vmin.xlane.f32.xlu1 %v3471_v42 }
 0x4e8   :  { %v1257_v29 = vpop.xlane.xlu0 %1256 }
 0x4e9   :  { %vm1273_vm4 = vcmp.le.f32.partialorder %v1225_v48, %v1257_v29 }
 0x4ea   :  { %v3475_v38 = vsel %vm1273_vm4, %v2734_v27, 128  ;;  %v1255_v8 = vpop.xlane.xlu1 %1254 }
 0x4eb   :  { %vm1272_vm5 = vcmp.le.f32.partialorder %v1224_v34, %v1255_v8  ;;  %v1501_v36 = vshra.s32 %v3475_v38, 16 }
 0x4ec   :  { %v3479_v62 = vsel %vm1272_vm5, %v2734_v27, 128  ;;  %v1253_v5 = vpop.xlane.xlu0 %1252  ;;  %vm2486_vm5 = vmmov 0  }
 0x4ed   :  { %vm1271_vm6 = vcmp.le.f32.partialorder %v1223_v56, %v1253_v5  ;;  %v3481_v21 = vcvt.s32.f32 %v1501_v36  ;;  %v1487_v44 = vshra.s32 %v3479_v62, 16 }
 0x4ee   :  { %v3485_v31 = vsel %vm1271_vm6, %v2734_v27, 128  ;;  %v1251_v48 = vpop.xlane.xlu1 %1250 }
 0x4ef   :  { %vm1270_vm7 = vcmp.le.f32.partialorder %v1222_v2, %v1251_v48  ;;  %1504 = vmin.xlane.f32.xlu0 %v3481_v21  ;;  %v3488_v17 = vcvt.s32.f32 %v1487_v44  ;;  %v1473_v34 = vshra.s32 %v3485_v31, 16 }
 0x4f0   :  { %v3492_v53 = vsel %vm1270_vm7, %v2734_v27, 128  ;;  %v1249_v23 = vpop.xlane.xlu0 %1248 }
 0x4f1   :  { %vm1269_vm8 = vcmp.le.f32.partialorder %v1221_v52, %v1249_v23  ;;  %1490 = vmin.xlane.f32.xlu1 %v3488_v17  ;;  %v3495_v56 = vcvt.s32.f32 %v1473_v34  ;;  %v1459_v13 = vshra.s32 %v3492_v53, 16 }
 0x4f2   :  { %v3499_v12 = vsel %vm1269_vm8, %v2734_v27, 128  ;;  %v1247_v2 = vpop.xlane.xlu1 %1246 }
 0x4f3   :  { %vm1268_vm9 = vcmp.le.f32.partialorder %v1220_v0, %v1247_v2  ;;  %1476 = vmin.xlane.f32.xlu0 %v3495_v56  ;;  %v3502_v9 = vcvt.s32.f32 %v1459_v13  ;;  %v1445_v29 = vshra.s32 %v3499_v12, 16 }
 0x4f4   :  { %v3506_v8 = vsel %vm1268_vm9, %v2734_v27, 128  ;;  %v1245_v52 = vpop.xlane.xlu0 %1244 }
 0x4f5   :  { %vm1267_vm10 = vcmp.le.f32.partialorder %v3444_v19, %v1245_v52  ;;  %1462 = vmin.xlane.f32.xlu1 %v3502_v9  ;;  %v3510_v36 = vcvt.s32.f32 %v1445_v29  ;;  %v1431_v5 = vshra.s32 %v3506_v8, 16 }
 0x4f6   :  { %v3514_v0 = vsel %vm1267_vm10, %v2734_v27, 128  ;;  %v1243_v44 = vpop.xlane.xlu1 %1242 }
 0x4f7   :  { %vm1266_vm11 = vcmp.le.f32.partialorder %v3447_v55, %v1243_v44  ;;  %1448 = vmin.xlane.f32.xlu0 %v3510_v36  ;;  %v3518_v48 = vcvt.s32.f32 %v1431_v5  ;;  %v1417_v34 = vshra.s32 %v3514_v0, 16 }
 0x4f8   :  { %v3522_v19 = vsel %vm1266_vm11, %v2734_v27, 128  ;;  %v1241_v23 = vpop.xlane.xlu0 %1240 }
 0x4f9   :  { %vm1265_vm12 = vcmp.le.f32.partialorder %v3450_v32, %v1241_v23  ;;  %1434 = vmin.xlane.f32.xlu1 %v3518_v48  ;;  %v3526_v13 = vcvt.s32.f32 %v1417_v34  ;;  %v1403_v2 = vshra.s32 %v3522_v19, 16 }
 0x4fa   :  { %v3530_v55 = vsel %vm1265_vm12, %v2734_v27, 128  ;;  %v1227_v29 = vpop.xlane.xlu1 %1226 }
 0x4fb   :  { %vm1258_vm13 = vcmp.le.f32.partialorder %v3453_v47, %v1227_v29  ;;  %1420 = vmin.xlane.f32.xlu0 %v3526_v13  ;;  %v3534_v52 = vcvt.s32.f32 %v1403_v2  ;;  %v1389_v5 = vshra.s32 %v3530_v55, 16 }
 0x4fc   :  { %v3538_v32 = vsel %vm1258_vm13, %v2734_v27, 128  ;;  %v1229_v44 = vpop.xlane.xlu0 %1228 }
 0x4fd   :  { %vm1259_vm14 = vcmp.le.f32.partialorder %v3456_v6, %v1229_v44  ;;  %1406 = vmin.xlane.f32.xlu1 %v3534_v52  ;;  %v3542_v34 = vcvt.s32.f32 %v1389_v5  ;;  %v1291_v23 = vshra.s32 %v3538_v32, 16 }
 0x4fe   :  { %v3546_v47 = vsel %vm1259_vm14, %v2734_v27, 128  ;;  %v1239_v29 = vpop.xlane.xlu1 %1238 }
 0x4ff   :  { %vm1264_vm15 = vcmp.le.f32.partialorder %v3459_v25, %v1239_v29  ;;  %1392 = vmin.xlane.f32.xlu0 %v3542_v34  ;;  %v3550_v2 = vcvt.s32.f32 %v1291_v23  ;;  %v1305_v57 = vshra.s32 %v3546_v47, 16 }
 0x500   :  { %v3554_v6 = vsel %vm1264_vm15, %v2734_v27, 128  ;;  %v1231_v44 = vpop.xlane.xlu0 %1230 }
 0x501   :  { %vm1260_vm1 = vcmp.le.f32.partialorder %v3462_v7, %v1231_v44  ;;  %1294 = vmin.xlane.f32.xlu1 %v3550_v2  ;;  %v3558_v5 = vcvt.s32.f32 %v1305_v57  ;;  %v1375_v63 = vshra.s32 %v3554_v6, 16 }
 0x502   :  { %v3562_v25 = vsel %vm1260_vm1, %v2734_v27, 128  ;;  %v1233_v29 = vpop.xlane.xlu1 %1232 }
 0x503   :  { %vm1261_vm2 = vcmp.le.f32.partialorder %v3465_v28, %v1233_v29  ;;  %1308 = vmin.xlane.f32.xlu0 %v3558_v5  ;;  %v3566_v23 = vcvt.s32.f32 %v1375_v63  ;;  %v1319_v58 = vshra.s32 %v3562_v25, 16 }
 0x504   :  { %v3570_v7 = vsel %vm1261_vm2, %v2734_v27, 128  ;;  %v1237_v44 = vpop.xlane.xlu0 %1236 }
 0x505   :  { %vm1263_vm3 = vcmp.le.f32.partialorder %v3468_v61, %v1237_v44  ;;  %1378 = vmin.xlane.f32.xlu1 %v3566_v23  ;;  %v3574_v57 = vcvt.s32.f32 %v1319_v58  ;;  %v1333_v49 = vshra.s32 %v3570_v7, 16 }
 0x506   :  { %v3578_v28 = vsel %vm1263_vm3, %v2734_v27, 128  ;;  %v1235_v29 = vpop.xlane.xlu1 %1234 }
 0x507   :  { %vm1262_vm4 = vcmp.le.f32.partialorder %v3471_v42, %v1235_v29  ;;  %1322 = vmin.xlane.f32.xlu0 %v3574_v57  ;;  %v3582_v63 = vcvt.s32.f32 %v1333_v49  ;;  %v1361_v24 = vshra.s32 %v3578_v28, 16  ;;  %v34_v49 = vcvt.s32.f32 %v2734_v27 }
 0x508   :  { %v3586_v61 = vsel %vm1262_vm4, %v2734_v27, 128  ;;  %v3998_v42 = vmov 0.0  }
 0x509   :  { %1336 = vmin.xlane.f32.xlu1 %v3582_v63  ;;  %v3589_v58 = vcvt.s32.f32 %v1361_v24  ;;  %v1347_v44 = vshra.s32 %v3586_v61, 16  ;;  %2320 = vmatprep.mubr.msk.f32.mxu1 %vm2486_vm5, %v3998_v42 }
 0x50a   :  { %2467 = vmatprep.mubr.msk.f32.mxu0 %vm2486_vm5, %v3998_v42  ;;  %2321 = vmatmul.mubr.f32.vlgmr.msra.gmra.mxu1 %v34_v49 }
 0x50b   :  { %1364 = vmin.xlane.f32.xlu0 %v3589_v58  ;;  %v3593_v43 = vcvt.s32.f32 %v1347_v44  ;;  %2380 = vmatpush3.msra.mxu1 %v2948_v15  ;;  %v1500_v15 = vand.u32 65535, %v3475_v38  ;;  %v1416_v38 = vand.u32 65535, %v3514_v0 }
 0x50c   :  { %2381 = vmatprep.subr.mxu1 %v2953_v39 }
 0x50d   :  { %1350 = vmin.xlane.f32.xlu1 %v3593_v43  ;;  %2382 = vmatpush3.msra.mxu1 %v2953_v39  ;;  %v1486_v39 = vand.u32 65535, %v3479_v62  ;;  %v1418_v29 = vcvt.s32.f32 %v1416_v38 }
 0x50e   :  { %2383 = vmatprep.subr.mxu1 %v2964_v46 }
 0x50f   :  { %2384 = vmatpush3.msra.mxu1 %v2964_v46  ;;  %v1472_v46 = vand.u32 65535, %v3485_v31 }
 0x510   :  { %2385 = vmatprep.subr.mxu1 %v2973_v4 }
 0x511   :  { %2386 = vmatpush3.msra.mxu1 %v2973_v4 }
 0x512   :  { %2387 = vmatprep.subr.mxu1 %v2982_v40 }
 0x513   :  { %2388 = vmatpush3.msra.mxu1 %v2982_v40  ;;  %v1502_v40 = vcvt.s32.f32 %v1500_v15 }
 0x514   :  { %2389 = vmatprep.subr.mxu1 %v2991_v41 }
 0x515   :  { %2390 = vmatpush3.msra.mxu1 %v2991_v41  ;;  %v1458_v41 = vand.u32 65535, %v3492_v53 }
 0x516   :  { %2391 = vmatprep.subr.mxu1 %v3000_v50 }
 0x517   :  { %2392 = vmatpush3.msra.mxu1 %v3000_v50  ;;  %v1460_v24 = vcvt.s32.f32 %v1458_v41 }
 0x518   :  { %2393 = vmatprep.subr.mxu1 %v3009_v51 }
 0x519   :  { %2394 = vmatpush3.msra.mxu1 %v3009_v51 }
 0x51a   :  { %2395 = vmatprep.subr.mxu1 %v3019_v10 }
 0x51b   :  { %2396 = vmatpush3.msra.mxu1 %v3019_v10  ;;  %v1488_v10 = vcvt.s32.f32 %v1486_v39 }
 0x51c   :  { %2397 = vmatprep.subr.mxu1 %v3032_v45 }
 0x51d   :  { %2398 = vmatpush3.msra.mxu1 %v3032_v45  ;;  %v1444_v45 = vand.u32 65535, %v3499_v12 }
 0x51e   :  { %2399 = vmatprep.subr.mxu1 %v3053_v1 }
 0x51f   :  { %2400 = vmatpush3.msra.mxu1 %v3053_v1  ;;  %v1446_v31 = vcvt.s32.f32 %v1444_v45 }
 0x520   :  { %2401 = vmatprep.subr.mxu1 %v3080_v33 }
 0x521   :  { %2402 = vmatpush3.msra.mxu1 %v3080_v33 }
 0x522   :  { %2403 = vmatprep.subr.mxu1 %v3107_v59 }
 0x523   :  { %2404 = vmatpush3.msra.mxu1 %v3107_v59  ;;  %v1474_v59 = vcvt.s32.f32 %v1472_v46 }
 0x524   :  { %2405 = vmatprep.subr.mxu1 %v3134_v54 }
 0x525   :  { %2406 = vmatpush3.msra.mxu1 %v3134_v54  ;;  %v1430_v54 = vand.u32 65535, %v3506_v8 }
 0x526   :  { %2407 = vmatprep.subr.mxu1 %v3157_v30 }
 0x527   :  { %2408 = vmatpush3.msra.mxu1 %v3157_v30  ;;  %v1432_v12 = vcvt.s32.f32 %v1430_v54 }
 0x528   :  { %2409 = vmatprep.subr.mxu1 %v3230_v16 }
 0x529   :  { %2410 = vmatpush3.msra.mxu1 %v3230_v16 }
 0x578   :  { %v3635_v4 = vpop.xlane.xlu0 %1504 }
 0x579   :  { %vm1506_vm6 = vcmp.eq.f32.partialorder %v3481_v21, %v3635_v4 }
 0x57a   :  { %v3640_v50 = vpop.xlane.xlu1 %1490  ;;  %v1507_v51 = vsel %vm1506_vm6, %v1502_v40, inf }
 0x57b   :  { %1508 = vmin.xlane.f32.xlu0 %v1507_v51  ;;  %vm1492_vm7 = vcmp.eq.f32.partialorder %v3488_v17, %v3640_v50  ;;  %v1402_v17 = vand.u32 65535, %v3522_v19 }
 0x57c   :  { %v3645_v1 = vpop.xlane.xlu0 %1476  ;;  %v1493_v33 = vsel %vm1492_vm7, %v1488_v10, inf }
 0x57d   :  { %1494 = vmin.xlane.f32.xlu1 %v1493_v33  ;;  %vm1478_vm8 = vcmp.eq.f32.partialorder %v3495_v56, %v3645_v1  ;;  %v1404_v15 = vcvt.s32.f32 %v1402_v17 }
 0x57e   :  { %v3650_v30 = vpop.xlane.xlu1 %1462  ;;  %v1479_v16 = vsel %vm1478_vm8, %v1474_v59, inf }
 0x57f   :  { %1480 = vmin.xlane.f32.xlu0 %v1479_v16  ;;  %vm1464_vm9 = vcmp.eq.f32.partialorder %v3502_v9, %v3650_v30  ;;  %v1388_v9 = vand.u32 65535, %v3530_v55 }
 0x580   :  { %v3655_v62 = vpop.xlane.xlu0 %1448  ;;  %v1465_v21 = vsel %vm1464_vm9, %v1460_v24, inf }
 0x581   :  { %1466 = vmin.xlane.f32.xlu1 %v1465_v21  ;;  %vm1450_vm10 = vcmp.eq.f32.partialorder %v3510_v36, %v3655_v62  ;;  %v1290_v36 = vand.u32 65535, %v3538_v32  ;;  %v1390_v46 = vcvt.s32.f32 %v1388_v9  ;;  %v1497_v9 = vcvt.f32.s32 %v3640_v50 }
 0x582   :  { %v3660_v53 = vpop.xlane.xlu1 %1434  ;;  %v1451_v56 = vsel %vm1450_vm10, %v1446_v31, inf }
 0x583   :  { %1452 = vmin.xlane.f32.xlu0 %v1451_v56  ;;  %vm1436_vm11 = vcmp.eq.f32.partialorder %v3518_v48, %v3660_v53  ;;  %v1304_v48 = vand.u32 65535, %v3546_v47  ;;  %v1292_v41 = vcvt.s32.f32 %v1290_v36 }
 0x584   :  { %v3665_v8 = vpop.xlane.xlu0 %1420  ;;  %v1437_v0 = vsel %vm1436_vm11, %v1432_v12, inf }
 0x585   :  { %1438 = vmin.xlane.f32.xlu1 %v1437_v0  ;;  %vm1422_vm12 = vcmp.eq.f32.partialorder %v3526_v13, %v3665_v8  ;;  %v1374_v13 = vand.u32 65535, %v3554_v6  ;;  %v1306_v10 = vcvt.s32.f32 %v1304_v48 }
 0x586   :  { %v3670_v19 = vpop.xlane.xlu1 %1406  ;;  %v1423_v44 = vsel %vm1422_vm12, %v1418_v29, inf }
 0x587   :  { %1424 = vmin.xlane.f32.xlu0 %v1423_v44  ;;  %vm1408_vm13 = vcmp.eq.f32.partialorder %v3534_v52, %v3670_v19  ;;  %v1318_v52 = vand.u32 65535, %v3562_v25  ;;  %v1376_v33 = vcvt.s32.f32 %v1374_v13 }
 0x588   :  { %v3675_v55 = vpop.xlane.xlu0 %1392  ;;  %v1409_v39 = vsel %vm1408_vm13, %v1404_v15, inf  ;;  %v1498_v15 = vshll.u32 %v1497_v9, 16 }
 0x589   :  { %1410 = vmin.xlane.f32.xlu1 %v1409_v39  ;;  %vm1394_vm14 = vcmp.eq.f32.partialorder %v3542_v34, %v3675_v55  ;;  %v1332_v34 = vand.u32 65535, %v3570_v7  ;;  %v1320_v54 = vcvt.s32.f32 %v1318_v52  ;;  %v1469_v52 = vcvt.f32.s32 %v3650_v30 }
 0x58a   :  { %v3680_v32 = vpop.xlane.xlu1 %1294  ;;  %v1395_v40 = vsel %vm1394_vm14, %v1390_v46, inf }
 0x58b   :  { %1396 = vmin.xlane.f32.xlu0 %v1395_v40  ;;  %vm1296_vm15 = vcmp.eq.f32.partialorder %v3550_v2, %v3680_v32  ;;  %v1360_v2 = vand.u32 65535, %v3578_v28  ;;  %v1334_v24 = vcvt.s32.f32 %v1332_v34 }
 0x58c   :  { %v3685_v47 = vpop.xlane.xlu0 %1308  ;;  %v1297_v51 = vsel %vm1296_vm15, %v1292_v41, inf }
 0x58d   :  { %1298 = vmin.xlane.f32.xlu1 %v1297_v51  ;;  %vm1310_vm1 = vcmp.eq.f32.partialorder %v3558_v5, %v3685_v47  ;;  %v1346_v5 = vand.u32 65535, %v3586_v61  ;;  %v1362_v38 = vcvt.s32.f32 %v1360_v2 }
 0x58e   :  { %v3690_v6 = vpop.xlane.xlu1 %1378  ;;  %v1311_v45 = vsel %vm1310_vm1, %v1306_v10, inf }
 0x58f   :  { %1312 = vmin.xlane.f32.xlu0 %v1311_v45  ;;  %vm1380_vm2 = vcmp.eq.f32.partialorder %v3566_v23, %v3690_v6  ;;  %v1348_v61 = vcvt.s32.f32 %v1346_v5  ;;  %v1470_v45 = vshll.u32 %v1469_v52, 16 }
 0x590   :  { %v3695_v25 = vpop.xlane.xlu0 %1322  ;;  %v1381_v59 = vsel %vm1380_vm2, %v1376_v33, inf  ;;  %v1455_v33 = vcvt.f32.s32 %v3655_v62  ;;  %v1301_v62 = vcvt.f32.s32 %v3680_v32 }
 0x591   :  { %1382 = vmin.xlane.f32.xlu1 %v1381_v59  ;;  %vm1324_vm3 = vcmp.eq.f32.partialorder %v3574_v57, %v3695_v25 }
 0x592   :  { %v3700_v7 = vpop.xlane.xlu1 %1336  ;;  %v1325_v16 = vsel %vm1324_vm3, %v1320_v54, inf  ;;  %v1456_v5 = vshll.u32 %v1455_v33, 16 }
 0x593   :  { %1326 = vmin.xlane.f32.xlu0 %v1325_v16  ;;  %vm1338_vm4 = vcmp.eq.f32.partialorder %v3582_v63, %v3700_v7  ;;  %v1441_v16 = vcvt.f32.s32 %v3660_v53 }
 0x594   :  { %v3704_v23 = vpop.xlane.xlu0 %1364  ;;  %v1339_v28 = vsel %vm1338_vm4, %v1334_v24, inf  ;;  %v1315_v24 = vcvt.f32.s32 %v3685_v47 }
 0x595   :  { %1340 = vmin.xlane.f32.xlu1 %v1339_v28  ;;  %vm1366_vm5 = vcmp.eq.f32.partialorder %v3589_v58, %v3704_v23  ;;  %v1511_v58 = vcvt.f32.s32 %v3635_v4  ;;  %v3999_v4 = vmov 1.0   ;;  %v1442_v32 = vshll.u32 %v1441_v16, 16 }
 0x596   :  { %v3708_v21 = vpop.xlane.xlu1 %1350  ;;  %v1367_v57 = vsel %vm1366_vm5, %v1362_v38, inf  ;;  %v1316_v47 = vshll.u32 %v1315_v24, 16 }
 0x597   :  { %1368 = vmin.xlane.f32.xlu0 %v1367_v57  ;;  %vm1352_vm6 = vcmp.eq.f32.partialorder %v3593_v43, %v3708_v21  ;;  %v1512_v29 = vshll.u32 %v1511_v58, 16  ;;  %v1483_v43 = vcvt.f32.s32 %v3645_v1 }
 0x598   :  { %v1353_v31 = vsel %vm1352_vm6, %v1348_v61, inf  ;;  %v1427_v61 = vcvt.f32.s32 %v3665_v8 }
 0x599   :  { %1354 = vmin.xlane.f32.xlu1 %v1353_v31  ;;  %v1484_v41 = vshll.u32 %v1483_v43, 16  ;;  %v1302_v31 = vshll.u32 %v1301_v62, 16 }
 0x5ca   :  { %v925_v17 = vpop.f32.mrf.mxu1 }
 0x5cb   :  { %v2470_v63 = vtrunc.f32 %v925_v17 }
 0x5cc   :  { %v2322_v56 = vpop.f32.mrf.mxu1 }
 0x5cd   :  { %v2471_v12 = vcvt.f32.s32 %v2470_v63  ;;  %v1329_v63 = vcvt.f32.s32 %v3695_v25  ;;  %v1343_v25 = vcvt.f32.s32 %v3700_v7 }
 0x5cf   :  { %930 = vst [vmem:[%s3978_s4] sm:$0x1] %v2471_v12 }
 0x604   :  { %v1509_v0 = vpop.xlane.xlu0 %1508 }
 0x605   :  { %v1510_v36 = vcvt.f32.s32 %v1509_v0  ;;  %v1428_v0 = vshll.u32 %v1427_v61, 16 }
 0x606   :  { %v1495_v44 = vpop.xlane.xlu1 %1494 }
 0x607   :  { %v3718_v48 = vadd.s32 %v1512_v29, %v1510_v36  ;;  %v1496_v39 = vcvt.f32.s32 %v1495_v44  ;;  %v1413_v29 = vcvt.f32.s32 %v3670_v19  ;;  %v1330_v19 = vshll.u32 %v1329_v63, 16 }
 0x608   :  { %v1481_v46 = vpop.xlane.xlu0 %1480 }
 0x609   :  { %vm1529_vm7 = vcmp.eq.s32.totalorder %v2734_v27, %v3718_v48  ;;  %v3722_v13 = vadd.s32 %v1498_v15, %v1496_v39  ;;  %v1482_v40 = vcvt.f32.s32 %v1481_v46  ;;  %v1414_v46 = vshll.u32 %v1413_v29, 16  ;;  %v4016_v29 = vld [vmem:[#allocation5_spill] sm:$0xff] }
 0x60a   :  { %2436 = vmatpush3.xpose.msk.msra.mxu0 %vm1529_vm7, %v3999_v4  ;;  %v1467_v50 = vpop.xlane.xlu1 %1466 }
 0x60b   :  { %2437 = vmatprep.subr.mxu0 %v3998_v42  ;;  %vm1528_vm8 = vcmp.eq.s32.totalorder %v2734_v27, %v3722_v13  ;;  %v3732_v51 = vadd.s32 %v1484_v41, %v1482_v40  ;;  %v1468_v10 = vcvt.f32.s32 %v1467_v50  ;;  %v1399_v40 = vcvt.f32.s32 %v3675_v55 }
 0x60c   :  { %v1453_v1 = vpop.xlane.xlu0 %1452  ;;  %v1385_v50 = vcvt.f32.s32 %v3690_v6  ;;  %v1371_v41 = vcvt.f32.s32 %v3704_v23 }
 0x60d   :  { %vm1527_vm9 = vcmp.eq.s32.totalorder %v2734_v27, %v3732_v51  ;;  %v3742_v2 = vadd.s32 %v1470_v45, %v1468_v10  ;;  %v1454_v59 = vcvt.f32.s32 %v1453_v1  ;;  %v1344_v1 = vshll.u32 %v1343_v25, 16 }
 0x60e   :  { %2438 = vmatpush3.xpose.msk.msra.mxu0 %vm1528_vm8, %v3999_v4  ;;  %v1439_v34 = vpop.xlane.xlu1 %1438  ;;  %v1357_v10 = vcvt.f32.s32 %v3708_v21  ;;  %v1386_v16 = vshll.u32 %v1385_v50, 16 }
 0x60f   :  { %2439 = vmatprep.subr.mxu0 %v3998_v42  ;;  %vm1526_vm10 = vcmp.eq.s32.totalorder %v2734_v27, %v3742_v2  ;;  %v3756_v38 = vadd.s32 %v1456_v5, %v1454_v59  ;;  %v1440_v57 = vcvt.f32.s32 %v1439_v34  ;;  %v1372_v5 = vshll.u32 %v1371_v41, 16 }
 0x610   :  { %v1425_v30 = vpop.xlane.xlu0 %1424  ;;  %v1358_v62 = vshll.u32 %v1357_v10, 16 }
 0x611   :  { %v1426_v56 = vcvt.f32.s32 %v1425_v30  ;;  %vm1525_vm11 = vcmp.eq.s32.totalorder %v2734_v27, %v3756_v38  ;;  %v3767_v8 = vadd.s32 %v1442_v32, %v1440_v57 }
 0x612   :  { %2440 = vmatpush3.xpose.msk.msra.mxu0 %vm1527_vm9, %v3999_v4  ;;  %v1411_v54 = vpop.xlane.xlu1 %1410 }
 0x613   :  { %2441 = vmatprep.subr.mxu0 %v3998_v42  ;;  %v1429_v15 = vadd.s32 %v1428_v0, %v1426_v56  ;;  %v1412_v43 = vcvt.f32.s32 %v1411_v54  ;;  %vm1524_vm13 = vcmp.eq.s32.totalorder %v2734_v27, %v3767_v8  ;;  %v1400_v54 = vshll.u32 %v1399_v40, 16 }
 0x614   :  { %v3752_v28 = vpop.xlane.xlu0 %1396 }
 0x615   :  { %vm1523_vm15 = vcmp.eq.s32.totalorder %v2734_v27, %v1429_v15  ;;  %v1415_v6 = vadd.s32 %v1414_v46, %v1412_v43  ;;  %v1398_v23 = vcvt.f32.s32 %v3752_v28 }
 0x616   :  { %2442 = vmatpush3.xpose.msk.msra.mxu0 %vm1526_vm10, %v3999_v4  ;;  %v1299_v53 = vpop.xlane.xlu1 %1298 }
 0x617   :  { %v1300_v17 = vcvt.f32.s32 %v1299_v53  ;;  %2443 = vmatprep.subr.mxu0 %v3998_v42  ;;  %vm1522_vm3 = vcmp.eq.s32.totalorder %v2734_v27, %v1415_v6  ;;  %v1401_v57 = vadd.s32 %v1400_v54, %v1398_v23 }
 0x618   :  { %v1313_v12 = vpop.xlane.xlu0 %1312 }
 0x619   :  { %v3769_v58 = vadd.s32 %v1302_v31, %v1300_v17  ;;  %v1314_v9 = vcvt.f32.s32 %v1313_v12  ;;  %vm1521_vm6 = vcmp.eq.s32.totalorder %v2734_v27, %v1401_v57 }
 0x61a   :  { %2444 = vmatpush3.xpose.msk.msra.mxu0 %vm1525_vm11, %v3999_v4  ;;  %v1383_v36 = vpop.xlane.xlu1 %1382 }
 0x61b   :  { %v3777_v44 = vadd.s32 %v1316_v47, %v1314_v9  ;;  %vm1514_vm12 = vcmp.eq.s32.totalorder %v2734_v27, %v3769_v58  ;;  %2445 = vmatprep.subr.mxu0 %v3998_v42  ;;  %v1384_v33 = vcvt.f32.s32 %v1383_v36 }
 0x61c   :  { %v1327_v39 = vpop.xlane.xlu0 %1326  ;;  %2411 = vmatprep.mubr.msk.f32.mxu1 %vm1514_vm12, %v3999_v4 }
 0x61d   :  { %vm1515_vm14 = vcmp.eq.s32.totalorder %v2734_v27, %v3777_v44  ;;  %v1328_v7 = vcvt.f32.s32 %v1327_v39  ;;  %v1387_v61 = vadd.s32 %v1386_v16, %v1384_v33  ;;  %v4018_v44 = vld [vmem:[#allocation6_spill] sm:$0xff]  ;;  %v4020_v39 = vld [vmem:[#allocation7_spill] sm:$0xff] }
 0x61e   :  { %2412 = vmatmul.mubr.msk.f32.vlgmr.msra.gmra.mxu1 %vm1515_vm14, %v3999_v4  ;;  %2446 = vmatpush3.xpose.msk.msra.mxu0 %vm1524_vm13, %v3999_v4  ;;  %v1341_v52 = vpop.xlane.xlu1 %1340 }
 0x61f   :  { %v1331_v34 = vadd.s32 %v1330_v19, %v1328_v7  ;;  %v1342_v55 = vcvt.f32.s32 %v1341_v52  ;;  %2447 = vmatprep.subr.mxu0 %v3998_v42  ;;  %vm1520_vm0 = vcmp.eq.s32.totalorder %v2734_v27, %v1387_v61 }
 0x620   :  { %v1369_v45 = vpop.xlane.xlu0 %1368 }
 0x621   :  { %v1345_v30 = vadd.s32 %v1344_v1, %v1342_v55  ;;  %v1370_v59 = vcvt.f32.s32 %v1369_v45  ;;  %vm1516_vm1 = vcmp.eq.s32.totalorder %v2734_v27, %v1331_v34 }
 0x622   :  { %2414 = vmatprep.mubr.msk.f32.mxu1 %vm1516_vm1, %v3999_v4  ;;  %2448 = vmatpush3.xpose.msk.msra.mxu0 %vm1523_vm15, %v3999_v4  ;;  %v1355_v21 = vpop.xlane.xlu1 %1354 }
 0x623   :  { %v1356_v24 = vcvt.f32.s32 %v1355_v21  ;;  %vm1517_vm2 = vcmp.eq.s32.totalorder %v2734_v27, %v1345_v30  ;;  %2449 = vmatprep.subr.mxu0 %v3998_v42  ;;  %v1373_v28 = vadd.s32 %v1372_v5, %v1370_v59 }
 0x624   :  { %2415 = vmatmul.mubr.msk.f32.gmra.mxu1 %vm1517_vm2, %v3999_v4 }
 0x625   :  { %v1359_v53 = vadd.s32 %v1358_v62, %v1356_v24  ;;  %vm1519_vm5 = vcmp.eq.s32.totalorder %v2734_v27, %v1373_v28 }
 0x626   :  { %2450 = vmatpush3.xpose.msk.msra.mxu0 %vm1522_vm3, %v3999_v4 }
 0x627   :  { %vm1518_vm4 = vcmp.eq.s32.totalorder %v2734_v27, %v1359_v53  ;;  %2451 = vmatprep.subr.mxu0 %v3998_v42 }
 0x628   :  { %2417 = vmatprep.mubr.msk.f32.mxu1 %vm1518_vm4, %v3999_v4 }
 0x629   :  { %2418 = vmatmul.mubr.msk.f32.gmra.mxu1 %vm1519_vm5, %v3999_v4 }
 0x62a   :  { %2420 = vmatprep.mubr.msk.f32.mxu1 %vm1520_vm0, %v3999_v4  ;;  %2452 = vmatpush3.xpose.msk.msra.mxu0 %vm1521_vm6, %v3999_v4 }
 0x62b   :  { %2453 = vmatprep.subr.mxu0 %v3998_v42 }
 0x62d   :  { %2421 = vmatmul.mubr.msk.f32.gmra.mxu1 %vm1521_vm6, %v3999_v4 }
 0x62e   :  { %2423 = vmatprep.mubr.msk.f32.mxu1 %vm1522_vm3, %v3999_v4  ;;  %2454 = vmatpush3.xpose.msk.msra.mxu0 %vm1520_vm0, %v3999_v4  ;;  %vm4000_vm0 = vcmask 261120  }
 0x62f   :  { %2455 = vmatprep.subr.mxu0 %v3998_v42  ;;  %vm4015_vm3 = vmmov %vm4000_vm0 }
 0x630   :  { %vm4021_vm6 = vmmov %vm4000_vm0 }
 0x631   :  { %2424 = vmatmul.mubr.msk.f32.gmra.mxu1 %vm1523_vm15, %v3999_v4  ;;  %vm4009_vm15 = vmmov %vm4000_vm0 }
 0x632   :  { %2426 = vmatprep.mubr.msk.f32.mxu1 %vm1524_vm13, %v3999_v4  ;;  %2456 = vmatpush3.xpose.msk.msra.mxu0 %vm1519_vm5, %v3999_v4  ;;  %vm4007_vm13 = vmmov %vm4000_vm0 }
 0x633   :  { %2457 = vmatprep.subr.mxu0 %v3998_v42  ;;  %vm4019_vm5 = vmmov %vm4000_vm0 }
 0x635   :  { %2427 = vmatmul.mubr.msk.f32.gmra.mxu1 %vm1525_vm11, %v3999_v4  ;;  %vm4005_vm11 = vmmov %vm4000_vm0 }
 0x636   :  { %2429 = vmatprep.mubr.msk.f32.mxu1 %vm1526_vm10, %v3999_v4  ;;  %2458 = vmatpush3.xpose.msk.msra.mxu0 %vm1518_vm4, %v3999_v4  ;;  %vm4004_vm10 = vmmov %vm4000_vm0 }
 0x637   :  { %2459 = vmatprep.subr.mxu0 %v3998_v42  ;;  %vm4017_vm4 = vmmov %vm4000_vm0 }
 0x639   :  { %2430 = vmatmul.mubr.msk.f32.gmra.mxu1 %vm1527_vm9, %v3999_v4  ;;  %vm4003_vm9 = vmmov %vm4000_vm0 }
 0x63a   :  { %2432 = vmatprep.mubr.msk.f32.mxu1 %vm1528_vm8, %v3999_v4  ;;  %2460 = vmatpush3.xpose.msk.msra.mxu0 %vm1517_vm2, %v3999_v4  ;;  %vm4002_vm8 = vmmov %vm4000_vm0 }
 0x63b   :  { %2461 = vmatprep.subr.mxu0 %v3998_v42  ;;  %vm4013_vm2 = vmmov %vm4000_vm0 }
 0x63d   :  { %2433 = vmatmul.mubr.msk.f32.gmra.mxu1 %vm1529_vm7, %v3999_v4  ;;  %vm4001_vm7 = vmmov %vm4000_vm0 }
 0x63e   :  { %2462 = vmatpush3.xpose.msk.msra.mxu0 %vm1516_vm1, %v3999_v4  ;;  %vm4011_vm1 = vmmov %vm4000_vm0 }
 0x63f   :  { %2463 = vmatprep.subr.mxu0 %v3998_v42 }
 0x642   :  { %2464 = vmatpush3.xpose.msk.msra.mxu0 %vm1515_vm14, %v3999_v4  ;;  %vm4008_vm14 = vmmov %vm4000_vm0 }
 0x643   :  { %2465 = vmatprep.subr.mxu0 %v3998_v42 }
 0x646   :  { %2466 = vmatpush3.xpose.msk.msra.mxu0 %vm1514_vm12, %v3999_v4  ;;  %vm4006_vm12 = vmmov %vm4000_vm0 }
 0x649   :  { %2468 = vmatmul.mubr.f32.vlgmr.msra.gmra.mxu0 %v34_v49 }
 0x6de   :  { %v2413_v48 = vpop.f32.mrf.mxu1 }
 0x6df   :  { %v1708_v13 = vadd.f32 %v2413_v48, %v3267_v26 }
 0x6e0   :  { %v1628_v51 = vpop.f32.mrf.mxu1 }
 0x6e1   :  { %1983 = vst.msk [vmem:[%s3977_s3 + $0x88] sm:$0xff] %vm4000_vm0, %v1708_v13  ;;  %v1707_v2 = vadd.f32 %v1628_v51, %v3274_v3 }
 0x6e3   :  { %1982 = vst.msk [vmem:[%s3977_s3 + $0x80] sm:$0xff] %vm4001_vm7, %v1707_v2 }
 0x6e4   :  { %v2416_v42 = vpop.f32.mrf.mxu1 }
 0x6e5   :  { %v1710_v27 = vadd.f32 %v2416_v42, %v3287_v37 }
 0x6e6   :  { %v1638_v49 = vpop.f32.mrf.mxu1 }
 0x6e7   :  { %1985 = vst.msk [vmem:[%s3977_s3 + $0x98] sm:$0xff] %vm4002_vm8, %v1710_v27  ;;  %v1709_v26 = vadd.f32 %v1638_v49, %v3295_v14 }
 0x6e9   :  { %1984 = vst.msk [vmem:[%s3977_s3 + $0x90] sm:$0xff] %vm4003_vm9, %v1709_v26  ;;  %v2419_v3 = vpop.f32.mrf.mxu1 }
 0x6ea   :  { %v1712_v4 = vadd.f32 %v2419_v3, %v3307_v11 }
 0x6eb   :  { %v1648_v38 = vpop.f32.mrf.mxu1 }
 0x6ec   :  { %1987 = vst.msk [vmem:[%s3977_s3 + $0xa8] sm:$0xff] %vm4004_vm10, %v1712_v4  ;;  %v1711_v37 = vadd.f32 %v1648_v38, %v3315_v18 }
 0x6ed   :  { %v2422_v32 = vpop.f32.mrf.mxu1 }
 0x6ee   :  { %1986 = vst.msk [vmem:[%s3977_s3 + $0xa0] sm:$0xff] %vm4005_vm11, %v1711_v37  ;;  %v1714_v14 = vadd.f32 %v2422_v32, %v3327_v35 }
 0x6ef   :  { %v1658_v31 = vpop.f32.mrf.mxu1 }
 0x6f0   :  { %1989 = vst.msk [vmem:[%s3977_s3 + $0xb8] sm:$0xff] %vm4006_vm12, %v1714_v14  ;;  %v1713_v11 = vadd.f32 %v1658_v31, %v3335_v20  ;;  %v4010_v20 = vld [vmem:[#allocation2_spill] sm:$0xff] }
 0x6f1   :  { %v2425_v17 = vpop.f32.mrf.mxu1 }
 0x6f2   :  { %1988 = vst.msk [vmem:[%s3977_s3 + $0xb0] sm:$0xff] %vm4007_vm13, %v1713_v11  ;;  %v1716_v18 = vadd.f32 %v2425_v17, %v3347_v60  ;;  %v4012_v60 = vld [vmem:[#allocation3_spill] sm:$0xff] }
 0x6f3   :  { %v1668_v47 = vpop.f32.mrf.mxu1 }
 0x6f4   :  { %1991 = vst.msk [vmem:[%s3977_s3 + $0xc8] sm:$0xff] %vm4008_vm14, %v1716_v18  ;;  %v1715_v35 = vadd.f32 %v1668_v47, %v3355_v22  ;;  %v4014_v22 = vld [vmem:[#allocation4_spill] sm:$0xff] }
 0x6f5   :  { %v2428_v63 = vpop.f32.mrf.mxu1 }
 0x6f6   :  { %1990 = vst.msk [vmem:[%s3977_s3 + $0xc0] sm:$0xff] %vm4009_vm15, %v1715_v35  ;;  %v1718_v56 = vadd.f32 %v2428_v63, %v4010_v20 }
 0x6f7   :  { %v1678_v12 = vpop.f32.mrf.mxu1 }
 0x6f8   :  { %1993 = vst.msk [vmem:[%s3977_s3 + $0xd8] sm:$0xff] %vm4011_vm1, %v1718_v56  ;;  %v1717_v8 = vadd.f32 %v1678_v12, %v4012_v60 }
 0x6f9   :  { %v2431_v58 = vpop.f32.mrf.mxu1 }
 0x6fa   :  { %1992 = vst.msk [vmem:[%s3977_s3 + $0xd0] sm:$0xff] %vm4013_vm2, %v1717_v8  ;;  %v1720_v9 = vadd.f32 %v2431_v58, %v4014_v22 }
 0x6fb   :  { %v1688_v0 = vpop.f32.mrf.mxu1 }
 0x6fc   :  { %1995 = vst.msk [vmem:[%s3977_s3 + $0xe8] sm:$0xff] %vm4015_vm3, %v1720_v9  ;;  %v1719_v36 = vadd.f32 %v1688_v0, %v4016_v29 }
 0x6fd   :  { %v2434_v25 = vpop.f32.mrf.mxu1 }
 0x6fe   :  { %1994 = vst.msk [vmem:[%s3977_s3 + $0xe0] sm:$0xff] %vm4017_vm4, %v1719_v36  ;;  %v1722_v15 = vadd.f32 %v2434_v25, %v4018_v44 }
 0x6ff   :  { %v1698_v43 = vpop.f32.mrf.mxu1 }
 0x700   :  { %1997 = vst.msk [vmem:[%s3977_s3 + $0xf8] sm:$0xff] %vm4019_vm5, %v1722_v15  ;;  %v1721_v19 = vadd.f32 %v1698_v43, %v4020_v39 }
 0x702   :  { %1996 = vst.msk [vmem:[%s3977_s3 + $0xf0] sm:$0xff] %vm4021_vm6, %v1721_v19 }
 0x709   :  { %v1806_v7 = vpop.f32.mrf.mxu0 }
 0x70a   :  { %v2472_v46 = vtrunc.f32 %v1806_v7 }
 0x70b   :  { %v2469_v40 = vpop.f32.mrf.mxu0 }
 0x70c   :  { %v2473_v50 = vcvt.f32.s32 %v2472_v46 }
 0x70e   :  { %1811 = vst [vmem:[%s3978_s4 + $0x1] sm:$0x1] %v2473_v50 }

</bundles_post_ra>
